<compile_context>
chip_gen: v7x
topology: tpu7x:2x2x1
jax: 0.10.0
libtpu: 0.0.40
codegen_flags: <defaults>
</compile_context>

<pallas_src>
import functools

import jax
import jax.numpy as jnp
from jax.experimental import pallas as pl
from jax.experimental.pallas import tpu as pltpu


def _fused_mlp_kernel(*refs, n_layers):
    """Fused MLP: refs = (x, w0, b0, w1, b1, ..., w_{L-1}, b_{L-1}, out).

    Weights are pre-transposed to (D_in, D_out); biases are (1, D_out).
    All operands are fully resident in VMEM (no grid, no streaming).
    """
    x_ref = refs[0]
    o_ref = refs[-1]

    h = x_ref[...]
    for i in range(n_layers):
        w_ref = refs[1 + 2 * i]
        b_ref = refs[2 + 2 * i]
        # (B, K) @ (K, N) on the MXU with f32 accumulation.
        h = jnp.dot(h, w_ref[...], preferred_element_type=jnp.float32)
        h = h + b_ref[...]          # (1, N) broadcasts over batch rows
        if i < n_layers - 1:        # ReLU on all but the last layer
            h = jnp.maximum(h, 0.0)
    o_ref[...] = h.astype(o_ref.dtype)


def prep_params(pt_params, dtype=jnp.float32):
    """One-time prep of PyTorch-layout Linear params for the fused kernel.

    pt_params: list of (weight (D_out, D_in), bias (D_out,)) per layer.
    Returns list of (weight (D_in, D_out), bias (1, D_out)) in `dtype`
    (use jnp.bfloat16 to halve weight bytes; keep f32 for exact reference match).
    """
    prepped = []
    for w, b in pt_params:
        prepped.append((jnp.asarray(w, dtype).T, jnp.asarray(b, dtype).reshape(1, -1)))
    return prepped


@jax.jit
def cond_variational_decoder_forward(x, prepped_params):
    """Fused forward. x: (B, D0). prepped_params: output of prep_params."""
    n_layers = len(prepped_params)
    B, _ = x.shape
    D_out = prepped_params[-1][0].shape[1]

    flat = []
    for w, b in prepped_params:
        flat += [w, b]

    # Right-sized VMEM budget: actual operand footprint with 2x margin for
    # compiler temporaries, plus a small fixed headroom.
    operand_bytes = (
        x.size * x.dtype.itemsize
        + sum(a.size * a.dtype.itemsize for a in flat)
        + B * D_out * x.dtype.itemsize
    )
    vmem_limit = int(2 * operand_bytes) + (4 << 20)

    kernel = functools.partial(_fused_mlp_kernel, n_layers=n_layers)
    vmem_spec = pl.BlockSpec(memory_space=pltpu.MemorySpace.VMEM)

    return pl.pallas_call(
        kernel,
        out_shape=jax.ShapeDtypeStruct((B, D_out), x.dtype),
        in_specs=[vmem_spec] * (1 + len(flat)),
        out_specs=vmem_spec,
        compiler_params=pltpu.CompilerParams(vmem_limit_bytes=vmem_limit),
    )(x, *flat)


def _reference_forward(x, pt_params):
    """Pure-JAX reference using the original PyTorch (D_out, D_in) layout."""
    n_layers = len(pt_params)
    for i, (w, b) in enumerate(pt_params):
        x = x @ w.T + b
        if i < n_layers - 1:
            x = jnp.maximum(x, 0.0)
    return x


if __name__ == "__main__":
    key = jax.random.PRNGKey(0)

    B = 2
    decoder_dims = (32, 256, 512, 1024)  # latent+cond -> hidden -> hidden -> output

    key, kx = jax.random.split(key)
    x = jax.random.normal(kx, (B, decoder_dims[0]), dtype=jnp.float32)

    # Deterministic PyTorch-style Linear init: uniform(-1/sqrt(fan_in), 1/sqrt(fan_in)).
    pt_params = []
    for d_in, d_out in zip(decoder_dims[:-1], decoder_dims[1:]):
        key, kw, kb = jax.random.split(key, 3)
        bound = 1.0 / jnp.sqrt(jnp.float32(d_in))
        w = jax.random.uniform(kw, (d_out, d_in), jnp.float32, -bound, bound)
        b = jax.random.uniform(kb, (d_out,), jnp.float32, -bound, bound)
        pt_params.append((w, b))

    # One-time transpose/reshape of the params (kept in f32 for exact check;
    # pass dtype=jnp.bfloat16 here to halve weight DMA in production).
    params = prep_params(pt_params, dtype=jnp.float32)

    out = cond_variational_decoder_forward(x, params)
    out = jax.block_until_ready(out)

    ref = _reference_forward(x, pt_params)
    assert out.shape == (B, decoder_dims[-1])
    assert jnp.allclose(out, ref, atol=2e-3, rtol=2e-3)

    print("KERNEL_OK")
</pallas_src>

<mosaic_0001>
module attributes {stable_mosaic.version = 11 : i64} {
  func.func @_fused_mlp_kernel(%arg0: memref<2x32xf32, #tpu.memory_space<vmem>>, %arg1: memref<32x256xf32, #tpu.memory_space<vmem>>, %arg2: memref<1x256xf32, #tpu.memory_space<vmem>>, %arg3: memref<256x512xf32, #tpu.memory_space<vmem>>, %arg4: memref<1x512xf32, #tpu.memory_space<vmem>>, %arg5: memref<512x1024xf32, #tpu.memory_space<vmem>>, %arg6: memref<1x1024xf32, #tpu.memory_space<vmem>>, %arg7: memref<2x1024xf32, #tpu.memory_space<vmem>>) attributes {dimension_semantics = [], scalar_prefetch = 0 : i64, scratch_operands = 0 : i64, tpu.core_type = #tpu.core_type<tc>} {
    %c0 = arith.constant 0 : index
    %c0_0 = arith.constant 0 : index
    %0 = vector.load %arg0[%c0, %c0_0] : memref<2x32xf32, #tpu.memory_space<vmem>>, vector<2x32xf32>
    %c0_1 = arith.constant 0 : index
    %c0_2 = arith.constant 0 : index
    %1 = vector.load %arg1[%c0_1, %c0_2] : memref<32x256xf32, #tpu.memory_space<vmem>>, vector<32x256xf32>
    %cst = arith.constant dense<0.000000e+00> : vector<2x256xf32>
    %2 = tpu.matmul %0, %1, %cst {dimension_numbers = #tpu.dot_dimension_numbers<[1], [0], [0], [1], [0, 0, 1, 1], [], []>} : vector<2x32xf32>, vector<32x256xf32>, vector<2x256xf32> -> vector<2x256xf32>
    %c0_3 = arith.constant 0 : index
    %c0_4 = arith.constant 0 : index
    %3 = vector.load %arg2[%c0_3, %c0_4] : memref<1x256xf32, #tpu.memory_space<vmem>>, vector<1x256xf32>
    %4 = vector.broadcast %3 : vector<1x256xf32> to vector<2x256xf32>
    %5 = arith.addf %2, %4 : vector<2x256xf32>
    %cst_5 = arith.constant 0.000000e+00 : f32
    %6 = vector.broadcast %cst_5 : f32 to vector<2x256xf32>
    %7 = arith.maximumf %5, %6 : vector<2x256xf32>
    %c0_6 = arith.constant 0 : index
    %c0_7 = arith.constant 0 : index
    %8 = vector.load %arg3[%c0_6, %c0_7] : memref<256x512xf32, #tpu.memory_space<vmem>>, vector<256x512xf32>
    %cst_8 = arith.constant dense<0.000000e+00> : vector<2x512xf32>
    %9 = tpu.matmul %7, %8, %cst_8 {dimension_numbers = #tpu.dot_dimension_numbers<[1], [0], [0], [1], [0, 0, 1, 1], [], []>} : vector<2x256xf32>, vector<256x512xf32>, vector<2x512xf32> -> vector<2x512xf32>
    %c0_9 = arith.constant 0 : index
    %c0_10 = arith.constant 0 : index
    %10 = vector.load %arg4[%c0_9, %c0_10] : memref<1x512xf32, #tpu.memory_space<vmem>>, vector<1x512xf32>
    %11 = vector.broadcast %10 : vector<1x512xf32> to vector<2x512xf32>
    %12 = arith.addf %9, %11 : vector<2x512xf32>
    %cst_11 = arith.constant 0.000000e+00 : f32
    %13 = vector.broadcast %cst_11 : f32 to vector<2x512xf32>
    %14 = arith.maximumf %12, %13 : vector<2x512xf32>
    %c0_12 = arith.constant 0 : index
    %c0_13 = arith.constant 0 : index
    %15 = vector.load %arg5[%c0_12, %c0_13] : memref<512x1024xf32, #tpu.memory_space<vmem>>, vector<512x1024xf32>
    %cst_14 = arith.constant dense<0.000000e+00> : vector<2x1024xf32>
    %16 = tpu.matmul %14, %15, %cst_14 {dimension_numbers = #tpu.dot_dimension_numbers<[1], [0], [0], [1], [0, 0, 1, 1], [], []>} : vector<2x512xf32>, vector<512x1024xf32>, vector<2x1024xf32> -> vector<2x1024xf32>
    %c0_15 = arith.constant 0 : index
    %c0_16 = arith.constant 0 : index
    %17 = vector.load %arg6[%c0_15, %c0_16] : memref<1x1024xf32, #tpu.memory_space<vmem>>, vector<1x1024xf32>
    %18 = vector.broadcast %17 : vector<1x1024xf32> to vector<2x1024xf32>
    %19 = arith.addf %16, %18 : vector<2x1024xf32>
    %c0_17 = arith.constant 0 : index
    %c0_18 = arith.constant 0 : index
    %20 = vector.load %arg7[%c0_17, %c0_18] : memref<2x1024xf32, #tpu.memory_space<vmem>>, vector<2x1024xf32>
    tpu.vector_store %arg7[%c0_17, %c0_18], %19 {strides = array<i32>} : memref<2x1024xf32, #tpu.memory_space<vmem>>, vector<2x1024xf32>,
    return
  }
}

</mosaic_0001>

<bundles_post_ra>
// kernel: cond_variational_decoder_forward.1
= control target key start
LH: loop header
LB: loop body
LE: loop exit
PB: predicated region body
PF: predicated region fallthrough
CT: control target
= control target key end

     0   :  { %12 = vsyncpa [#allocation3], 0  ;;  %s2775_s0 = inlined_call_operand.hbm [shape: f32[2,32], index: 0, kind: input, shape index: {}]   ;;  %s2776_s1 = inlined_call_operand.hbm [shape: f32[32,256], index: 1, kind: input, shape index: {}]   ;;  %s2777_s2 = inlined_call_operand.hbm [shape: f32[1,256], index: 2, kind: input, shape index: {}]   ;;  %s2778_s3 = inlined_call_operand.hbm [shape: f32[256,512], index: 3, kind: input, shape index: {}]   ;;  %s2779_s4 = inlined_call_operand.hbm [shape: f32[1,512], index: 4, kind: input, shape index: {}]   ;;  %s2780_s5 = inlined_call_operand.hbm [shape: f32[512,1024], index: 5, kind: input, shape index: {}]   ;;  %s2781_s6 = inlined_call_operand.hbm [shape: f32[1,1024], index: 6, kind: input, shape index: {}]   ;;  %s2782_s7 = inlined_call_operand.hbm [shape: f32[2,1024], index: 7, kind: output, shape index: {}]  }
   0x1   :  { %13 = vsyncpa [#allocation6], 0 }
   0x2   :  { %14 = vsyncpa [#allocation9], 0 }
   0x3   :  { %15 = vsyncpa [#allocation12], 0 }
   0x4   :  { %16 = vsyncpa [#allocation4], 0  ;;  %s2561_s24 = smov [#allocation5]   ;;  %s2375_s28 = scalar_lea.hbm %s2776_s1, 1024 }
   0x5   :  { %s32_s25 = sshll.u32 %s2561_s24, 4  ;;  %p2376_p0 = scmp.ne.s32.totalorder %s2776_s1, %s2375_s28  ;;  %s33_s25 = int_to_ptr.vmem [resolvable:$true] %s32_s25 }
   0x6   :  { %p2379_p1 = scmp.lt.u32.totalorder %s2375_s28, %s2776_s1 }
   0x8   :  { %p2381_p2 = pnand %p2379_p1, %p2376_p0 }
   0xa   :  { %2384 = shalt.err (!%p2381_p2)
}
   0xb   :  { %s2385_s10 = scalar_lea.vmem %s33_s25, 1024  ;;  %p2390_p4 = scmp.lt.s32.totalorder %s33_s25, %s33_s25 }
   0xc   :  { %p2386_p3 = scmp.ne.s32.totalorder %s33_s25, %s2385_s10  ;;  %p2391_p5 = scmp.lt.s32.totalorder %s2385_s10, %s2385_s10 }
   0xe   :  { %p2392_p6 = por %p2391_p5, %p2390_p4 }
  0x10   :  { %p2393_p7 = pnand %p2392_p6, %p2386_p3 }
  0x12   :  { %2396 = shalt.err (!%p2393_p7)
}
  0x13   :  { %s2562_s11 = smov 256   ;;  %s2563_s12 = smov 16  }
  0x14   :  { %38 = dma.hbm_to_vmem [thread:$0]  %s2776_s1, 1024, %s33_s25, [#allocation6], %s2562_s11, %s2562_s11, %s2563_s12  }
  0x15   :  { %s2564_s15 = smov [#allocation8]   ;;  %s2397_s19 = scalar_lea.hbm %s2778_s3, 16384 }
  0x16   :  { %s54_s16 = sshll.u32 %s2564_s15, 4  ;;  %p2398_p8 = scmp.ne.s32.totalorder %s2778_s3, %s2397_s19  ;;  %s55_s16 = int_to_ptr.vmem [resolvable:$true] %s54_s16 }
  0x17   :  { %p2401_p9 = scmp.lt.u32.totalorder %s2397_s19, %s2778_s3 }
  0x19   :  { %p2403_p10 = pnand %p2401_p9, %p2398_p8 }
  0x1b   :  { %2406 = shalt.err (!%p2403_p10)
}
  0x1c   :  { %s2407_s24 = scalar_lea.vmem %s55_s16, 16384  ;;  %p2412_p12 = scmp.lt.s32.totalorder %s55_s16, %s55_s16 }
  0x1d   :  { %p2408_p11 = scmp.ne.s32.totalorder %s55_s16, %s2407_s24  ;;  %p2413_p13 = scmp.lt.s32.totalorder %s2407_s24, %s2407_s24 }
  0x1f   :  { %p2414_p0 = por %p2413_p13, %p2412_p12 }
  0x21   :  { %p2415_p1 = pnand %p2414_p0, %p2408_p11 }
  0x23   :  { %2418 = shalt.err (!%p2415_p1)
}
  0x24   :  { %s2565_s1 = smov 512   ;;  %s2566_s25 = smov 32  }
  0x25   :  { %60 = dma.hbm_to_vmem [thread:$0]  %s2778_s3, 16384, %s55_s16, [#allocation9], %s2565_s1, %s2565_s1, %s2566_s25  }
  0x26   :  { %s2567_s28 = smov [#allocation11]   ;;  %s2419_s9 = scalar_lea.hbm %s2780_s5, 65536 }
  0x27   :  { %s76_s29 = sshll.u32 %s2567_s28, 4  ;;  %p2420_p2 = scmp.ne.s32.totalorder %s2780_s5, %s2419_s9  ;;  %s77_s29 = int_to_ptr.vmem [resolvable:$true] %s76_s29 }
  0x28   :  { %p2423_p3 = scmp.lt.u32.totalorder %s2419_s9, %s2780_s5 }
  0x2a   :  { %p2425_p4 = pnand %p2423_p3, %p2420_p2 }
  0x2c   :  { %2428 = shalt.err (!%p2425_p4)
}
  0x2d   :  { %s2429_s14 = scalar_lea.vmem %s77_s29, 65536  ;;  %p2434_p6 = scmp.lt.s32.totalorder %s77_s29, %s77_s29 }
  0x2e   :  { %p2430_p5 = scmp.ne.s32.totalorder %s77_s29, %s2429_s14  ;;  %p2435_p7 = scmp.lt.s32.totalorder %s2429_s14, %s2429_s14 }
  0x30   :  { %p2436_p8 = por %p2435_p7, %p2434_p6 }
  0x32   :  { %p2437_p9 = pnand %p2436_p8, %p2430_p5 }
  0x34   :  { %2440 = shalt.err (!%p2437_p9)
}
  0x35   :  { %s2568_s3 = smov 1024   ;;  %s2569_s15 = smov 64  }
  0x36   :  { %82 = dma.hbm_to_vmem [thread:$0]  %s2780_s5, 65536, %s77_s29, [#allocation12], %s2568_s3, %s2568_s3, %s2569_s15  }
  0x37   :  { %s2570_s18 = smov [#allocation2]   ;;  %s2571_s20 = smov [#allocation7]  }
  0x38   :  { %s23_s19 = sshll.u32 %s2570_s18, 4  ;;  %s45_s21 = sshll.u32 %s2571_s20, 4  ;;  %s24_s19 = int_to_ptr.vmem [resolvable:$true] %s23_s19  ;;  %s46_s21 = int_to_ptr.vmem [resolvable:$true] %s45_s21 }
  0x39   :  { %s2441_s24 = scalar_lea.hbm %s2775_s0, 32 }
  0x3a   :  { %p2442_p10 = scmp.ne.s32.totalorder %s2775_s0, %s2441_s24  ;;  %p2445_p11 = scmp.lt.u32.totalorder %s2441_s24, %s2775_s0 }
  0x3c   :  { %p2447_p12 = pnand %p2445_p11, %p2442_p10 }
  0x3e   :  { %2450 = shalt.err (!%p2447_p12)
}
  0x3f   :  { %s2451_s5 = scalar_lea.vmem %s24_s19, 32  ;;  %p2456_p0 = scmp.lt.s32.totalorder %s24_s19, %s24_s19 }
  0x40   :  { %p2452_p13 = scmp.ne.s32.totalorder %s24_s19, %s2451_s5  ;;  %p2457_p1 = scmp.lt.s32.totalorder %s2451_s5, %s2451_s5 }
  0x42   :  { %p2458_p2 = por %p2457_p1, %p2456_p0 }
  0x44   :  { %p2459_p3 = pnand %p2458_p2, %p2452_p13 }
  0x46   :  { %2462 = shalt.err (!%p2459_p3)
}
  0x47   :  { %26 = dma.hbm_to_vmem [thread:$0]  %s2775_s0, 32, %s24_s19, [#allocation3]  }
  0x48   :  { %s2463_s9 = scalar_lea.hbm %s2777_s2, 32 }
  0x49   :  { %p2464_p4 = scmp.ne.s32.totalorder %s2777_s2, %s2463_s9  ;;  %p2467_p5 = scmp.lt.u32.totalorder %s2463_s9, %s2777_s2 }
  0x4b   :  { %p2469_p6 = pnand %p2467_p5, %p2464_p4 }
  0x4d   :  { %2472 = shalt.err (!%p2469_p6)
}
  0x4e   :  { %s2473_s14 = scalar_lea.vmem %s46_s21, 32  ;;  %p2478_p8 = scmp.lt.s32.totalorder %s46_s21, %s46_s21 }
  0x4f   :  { %p2474_p7 = scmp.ne.s32.totalorder %s46_s21, %s2473_s14  ;;  %p2479_p9 = scmp.lt.s32.totalorder %s2473_s14, %s2473_s14 }
  0x51   :  { %p2480_p10 = por %p2479_p9, %p2478_p8 }
  0x53   :  { %p2481_p11 = pnand %p2480_p10, %p2474_p7 }
  0x55   :  { %2484 = shalt.err (!%p2481_p11)
}
  0x56   :  { %48 = dma.hbm_to_vmem [thread:$0]  %s2777_s2, 32, %s46_s21, [#allocation6]  }
  0x57   :  { %s2572_s15 = smov [#allocation10]   ;;  %s2573_s17 = smov [#allocation13]  }
  0x58   :  { %s67_s16 = sshll.u32 %s2572_s15, 4  ;;  %s89_s18 = sshll.u32 %s2573_s17, 4  ;;  %s68_s16 = int_to_ptr.vmem [resolvable:$true] %s67_s16  ;;  %s90_s18 = int_to_ptr.vmem [resolvable:$true] %s89_s18 }
  0x59   :  { %s2485_s22 = scalar_lea.hbm %s2779_s4, 64 }
  0x5a   :  { %p2486_p12 = scmp.ne.s32.totalorder %s2779_s4, %s2485_s22  ;;  %p2489_p13 = scmp.lt.u32.totalorder %s2485_s22, %s2779_s4 }
  0x5c   :  { %p2491_p0 = pnand %p2489_p13, %p2486_p12 }
  0x5e   :  { %2494 = shalt.err (!%p2491_p0)
}
  0x5f   :  { %s2495_s2 = scalar_lea.vmem %s68_s16, 64  ;;  %p2500_p2 = scmp.lt.s32.totalorder %s68_s16, %s68_s16 }
  0x60   :  { %p2496_p1 = scmp.ne.s32.totalorder %s68_s16, %s2495_s2  ;;  %p2501_p3 = scmp.lt.s32.totalorder %s2495_s2, %s2495_s2 }
  0x62   :  { %p2502_p4 = por %p2501_p3, %p2500_p2 }
  0x64   :  { %p2503_p5 = pnand %p2502_p4, %p2496_p1 }
  0x66   :  { %2506 = shalt.err (!%p2503_p5)
}
  0x67   :  { %70 = dma.hbm_to_vmem [thread:$0]  %s2779_s4, 64, %s68_s16, [#allocation9]  }
  0x68   :  { %s2507_s28 = scalar_lea.hbm %s2781_s6, 128 }
  0x69   :  { %p2508_p6 = scmp.ne.s32.totalorder %s2781_s6, %s2507_s28  ;;  %p2511_p7 = scmp.lt.u32.totalorder %s2507_s28, %s2781_s6 }
  0x6b   :  { %p2513_p8 = pnand %p2511_p7, %p2508_p6 }
  0x6d   :  { %2516 = shalt.err (!%p2513_p8)
}
  0x6e   :  { %s2517_s10 = scalar_lea.vmem %s90_s18, 128  ;;  %p2522_p10 = scmp.lt.s32.totalorder %s90_s18, %s90_s18 }
  0x6f   :  { %p2518_p9 = scmp.ne.s32.totalorder %s90_s18, %s2517_s10  ;;  %p2523_p11 = scmp.lt.s32.totalorder %s2517_s10, %s2517_s10 }
  0x71   :  { %p2524_p12 = por %p2523_p11, %p2522_p10 }
  0x73   :  { %p2525_p13 = pnand %p2524_p12, %p2518_p9 }
  0x75   :  { %2528 = shalt.err (!%p2525_p13)
}
  0x76   :  { %92 = dma.hbm_to_vmem [thread:$0]  %s2781_s6, 128, %s90_s18, [#allocation12]  }
  0x77   :  { %2551 = dma.done.wait [#allocation3], 32  }
  0x78   :  { %2552 = vsyncadd [#allocation3], 4294967264 }
  0x79   :  { %2553 = dma.done.wait [#allocation6], 1056  }
  0x7a   :  { %2554 = vsyncadd [#allocation6], 4294966240 }
  0x7b   :  { %2555 = dma.done.wait [#allocation9], 16448  }
  0x7c   :  { %2556 = vsyncadd [#allocation9], 4294950848 }
  0x7d   :  { %2557 = dma.done.wait [#allocation12], 65664  }
  0x7e   :  { %2558 = vsyncadd [#allocation12], 4294901632  ;;  %v2574_v0 = vmov 0.0   ;;  %v116_v1 = vld [vmem:[#allocation5 + $0x8] sm:$0xff]  ;;  %v118_v2 = vld [vmem:[#allocation5 + $0x18] sm:$0xff]  ;;  %vm135_vm0 = vcmask 261120  }
  0x7f   :  { %203 = vmatprep.mubr.f32.mxu0 %v2574_v0  ;;  %v115_v3 = vld [vmem:[#allocation5] sm:$0xff]  ;;  %v1695_v4 = vpack.c.bf16 %v118_v2, %v116_v1  ;;  %v117_v5 = vld [vmem:[#allocation5 + $0x10] sm:$0xff]  ;;  %v120_v6 = vld [vmem:[#allocation5 + $0x28] sm:$0xff]  ;;  %s2576_s6 = smov [#allocation14]  }
  0x80   :  { %v122_v7 = vld [vmem:[#allocation5 + $0x38] sm:$0xff]  ;;  %v1697_v8 = vpack.c.bf16 %v117_v5, %v115_v3  ;;  %v119_v10 = vld [vmem:[#allocation5 + $0x20] sm:$0xff]  ;;  %v121_v11 = vld [vmem:[#allocation5 + $0x30] sm:$0xff]  ;;  %s1682_s12 = sshll.u32 %s2576_s6, 4  ;;  %s1683_s12 = int_to_ptr.vmem [resolvable:$true] %s1682_s12 }
  0x81   :  { %v1699_v9 = vpack.c.bf16 %v122_v7, %v120_v6  ;;  %1696 = vmatprep.subr.bf16.mxu0 %v1695_v4  ;;  %v213_v12 = vld [vmem:[#allocation8 + $0x8] sm:$0xff]  ;;  %v215_v14 = vld [vmem:[#allocation8 + $0x18] sm:$0xff]  ;;  %v1701_v15 = vpack.c.bf16 %v121_v11, %v119_v10  ;;  %v212_v18 = vld [vmem:[#allocation8] sm:$0xff]  ;;  %s2529_s13 = scalar_lea.vmem %s1683_s12, 256  ;;  %p2534_p1 = scmp.lt.s32.totalorder %s1683_s12, %s1683_s12 }
  0x82   :  { %v217_v13 = vld [vmem:[#allocation8 + $0x28] sm:$0xff]  ;;  %1698 = vmatpush1.bf16.msra.mxu0 %v1697_v8  ;;  %v219_v17 = vld [vmem:[#allocation8 + $0x38] sm:$0xff]  ;;  %v216_v19 = vld [vmem:[#allocation8 + $0x20] sm:$0xff]  ;;  %p2530_p0 = scmp.ne.s32.totalorder %s1683_s12, %s2529_s13  ;;  %p2535_p2 = scmp.lt.s32.totalorder %s2529_s13, %s2529_s13 }
  0x83   :  { %v1703_v16 = vpack.c.bf16 %v217_v13, %v213_v12  ;;  %1700 = vmatprep.subr.bf16.mxu0 %v1699_v9  ;;  %v1767_v20 = vpack.c.bf16 %v219_v17, %v215_v14  ;;  %v1705_v21 = vpack.c.bf16 %v216_v19, %v212_v18  ;;  %v214_v22 = vld [vmem:[#allocation8 + $0x10] sm:$0xff]  ;;  %v221_v24 = vld [vmem:[#allocation8 + $0x48] sm:$0xff]  ;;  %v223_v26 = vld [vmem:[#allocation8 + $0x58] sm:$0xff] }
  0x84   :  { %v218_v23 = vld [vmem:[#allocation8 + $0x30] sm:$0xff]  ;;  %v225_v25 = vld [vmem:[#allocation8 + $0x68] sm:$0xff]  ;;  %v227_v27 = vld [vmem:[#allocation8 + $0x78] sm:$0xff]  ;;  %p2536_p3 = por %p2535_p2, %p2534_p1 }
  0x85   :  { %1704 = vmatprep.subr.bf16.mxu1 %v1703_v16  ;;  %v1707_v28 = vpack.c.bf16 %v225_v25, %v221_v24  ;;  %v220_v29 = vld [vmem:[#allocation8 + $0x40] sm:$0xff]  ;;  %v114_v31 = vld [vmem:[#allocation2] sm:$0x3]  ;;  %v1769_v32 = vpack.c.bf16 %v218_v23, %v214_v22  ;;  %v229_v34 = vld [vmem:[#allocation8 + $0x88] sm:$0xff]  ;;  %v1771_v36 = vpack.c.bf16 %v227_v27, %v223_v26 }
  0x86   :  { %1706 = vmatpush1.bf16.msra.mxu1 %v1705_v21  ;;  %v224_v30 = vld [vmem:[#allocation8 + $0x60] sm:$0xff]  ;;  %1702 = vmatpush1.bf16.msra.mxu0 %v1701_v15  ;;  %v233_v35 = vld [vmem:[#allocation8 + $0xa8] sm:$0xff]  ;;  %v222_v37 = vld [vmem:[#allocation8 + $0x50] sm:$0xff]  ;;  %p2537_p4 = pnand %p2536_p3, %p2530_p0 }
  0x87   :  { %v1709_v33 = vpack.c.bf16 %v224_v30, %v220_v29  ;;  %1768 = vmatprep.subr.bf16.mxu0 %v1767_v20  ;;  %1708 = vmatprep.subr.bf16.mxu1 %v1707_v28  ;;  %v226_v38 = vld [vmem:[#allocation8 + $0x70] sm:$0xff]  ;;  %v1711_v39 = vpack.c.bf16 %v233_v35, %v229_v34  ;;  %v228_v40 = vld [vmem:[#allocation8 + $0x80] sm:$0xff]  ;;  %v231_v41 = vld [vmem:[#allocation8 + $0x98] sm:$0xff] }
  0x88   :  { %v235_v42 = vld [vmem:[#allocation8 + $0xb8] sm:$0xff]  ;;  %v232_v43 = vld [vmem:[#allocation8 + $0xa0] sm:$0xff]  ;;  %v237_v45 = vld [vmem:[#allocation8 + $0xc8] sm:$0xff]  ;;  %v1773_v47 = vpack.c.bf16 %v226_v38, %v222_v37 }
  0x89   :  { %1694 = vmatmul.mubr.msk.f32.vlgmr.msra.gmra.mrb[0].mxu0 %vm135_vm0, %v114_v31  ;;  %v1713_v44 = vpack.c.bf16 %v232_v43, %v228_v40  ;;  %v241_v46 = vld [vmem:[#allocation8 + $0xe8] sm:$0xff]  ;;  %v236_v49 = vld [vmem:[#allocation8 + $0xc0] sm:$0xff]  ;;  %v1775_v51 = vpack.c.bf16 %v235_v42, %v231_v41  ;;  %v230_v52 = vld [vmem:[#allocation8 + $0x90] sm:$0xff] }
  0x8a   :  { %1710 = vmatpush1.bf16.msra.mxu1 %v1709_v33  ;;  %1770 = vmatpush1.bf16.msra.mxu0 %v1769_v32  ;;  %v1715_v48 = vpack.c.bf16 %v241_v46, %v237_v45  ;;  %v240_v50 = vld [vmem:[#allocation8 + $0xe0] sm:$0xff]  ;;  %v234_v53 = vld [vmem:[#allocation8 + $0xb0] sm:$0xff]  ;;  %v245_v54 = vld [vmem:[#allocation8 + $0x108] sm:$0xff] }
  0x8b   :  { %1712 = vmatprep.subr.bf16.mxu1 %v1711_v39  ;;  %1772 = vmatprep.subr.bf16.mxu0 %v1771_v36  ;;  %v239_v55 = vld [vmem:[#allocation8 + $0xd8] sm:$0xff]  ;;  %v249_v57 = vld [vmem:[#allocation8 + $0x128] sm:$0xff]  ;;  %v1717_v58 = vpack.c.bf16 %v240_v50, %v236_v49  ;;  %v1777_v59 = vpack.c.bf16 %v234_v53, %v230_v52  ;;  %v238_v60 = vld [vmem:[#allocation8 + $0xd0] sm:$0xff] }
  0x8c   :  { %v243_v56 = vld [vmem:[#allocation8 + $0xf8] sm:$0xff]  ;;  %v1719_v61 = vpack.c.bf16 %v249_v57, %v245_v54  ;;  %v244_v62 = vld [vmem:[#allocation8 + $0x100] sm:$0xff]  ;;  %v242_v1 = vld [vmem:[#allocation8 + $0xf0] sm:$0xff] }
  0x8d   :  { %v248_v63 = vld [vmem:[#allocation8 + $0x120] sm:$0xff]  ;;  %v1779_v0 = vpack.c.bf16 %v243_v56, %v239_v55  ;;  %v253_v2 = vld [vmem:[#allocation8 + $0x148] sm:$0xff]  ;;  %v247_v4 = vld [vmem:[#allocation8 + $0x118] sm:$0xff]  ;;  %v1781_v7 = vpack.c.bf16 %v242_v1, %v238_v60 }
  0x8e   :  { %1714 = vmatpush1.bf16.msra.mxu1 %v1713_v44  ;;  %1774 = vmatpush1.bf16.msra.mxu0 %v1773_v47  ;;  %v257_v3 = vld [vmem:[#allocation8 + $0x168] sm:$0xff]  ;;  %v251_v5 = vld [vmem:[#allocation8 + $0x138] sm:$0xff]  ;;  %v1721_v6 = vpack.c.bf16 %v248_v63, %v244_v62  ;;  %v246_v8 = vld [vmem:[#allocation8 + $0x110] sm:$0xff] }
  0x8f   :  { %1716 = vmatprep.subr.bf16.mxu1 %v1715_v48  ;;  %1776 = vmatprep.subr.bf16.mxu0 %v1775_v51  ;;  %v1723_v9 = vpack.c.bf16 %v257_v3, %v253_v2  ;;  %v252_v10 = vld [vmem:[#allocation8 + $0x140] sm:$0xff]  ;;  %v1783_v12 = vpack.c.bf16 %v251_v5, %v247_v4  ;;  %v250_v13 = vld [vmem:[#allocation8 + $0x130] sm:$0xff]  ;;  %v261_v14 = vld [vmem:[#allocation8 + $0x188] sm:$0xff] }
  0x90   :  { %v256_v11 = vld [vmem:[#allocation8 + $0x160] sm:$0xff]  ;;  %v265_v15 = vld [vmem:[#allocation8 + $0x1a8] sm:$0xff]  ;;  %v255_v16 = vld [vmem:[#allocation8 + $0x158] sm:$0xff]  ;;  %v1785_v19 = vpack.c.bf16 %v250_v13, %v246_v8 }
  0x91   :  { %v259_v17 = vld [vmem:[#allocation8 + $0x178] sm:$0xff]  ;;  %v1725_v18 = vpack.c.bf16 %v256_v11, %v252_v10  ;;  %v254_v20 = vld [vmem:[#allocation8 + $0x150] sm:$0xff]  ;;  %v1727_v21 = vpack.c.bf16 %v265_v15, %v261_v14  ;;  %v260_v22 = vld [vmem:[#allocation8 + $0x180] sm:$0xff] }
  0x92   :  { %1718 = vmatpush1.bf16.msra.mxu1 %v1717_v58  ;;  %1778 = vmatpush1.bf16.msra.mxu0 %v1777_v59  ;;  %v264_v23 = vld [vmem:[#allocation8 + $0x1a0] sm:$0xff]  ;;  %v1787_v24 = vpack.c.bf16 %v259_v17, %v255_v16  ;;  %v258_v25 = vld [vmem:[#allocation8 + $0x170] sm:$0xff]  ;;  %v269_v26 = vld [vmem:[#allocation8 + $0x1c8] sm:$0xff] }
  0x93   :  { %1720 = vmatprep.subr.bf16.mxu1 %v1719_v61  ;;  %1780 = vmatprep.subr.bf16.mxu0 %v1779_v0  ;;  %v273_v27 = vld [vmem:[#allocation8 + $0x1e8] sm:$0xff]  ;;  %v263_v28 = vld [vmem:[#allocation8 + $0x198] sm:$0xff]  ;;  %v1729_v30 = vpack.c.bf16 %v264_v23, %v260_v22  ;;  %v1789_v31 = vpack.c.bf16 %v258_v25, %v254_v20  ;;  %v262_v32 = vld [vmem:[#allocation8 + $0x190] sm:$0xff] }
  0x94   :  { %v267_v29 = vld [vmem:[#allocation8 + $0x1b8] sm:$0xff]  ;;  %v1731_v33 = vpack.c.bf16 %v273_v27, %v269_v26  ;;  %v268_v34 = vld [vmem:[#allocation8 + $0x1c0] sm:$0xff]  ;;  %v266_v37 = vld [vmem:[#allocation8 + $0x1b0] sm:$0xff] }
  0x95   :  { %v272_v35 = vld [vmem:[#allocation8 + $0x1e0] sm:$0xff]  ;;  %v1791_v36 = vpack.c.bf16 %v267_v29, %v263_v28  ;;  %v277_v38 = vld [vmem:[#allocation8 + $0x208] sm:$0xff]  ;;  %v271_v40 = vld [vmem:[#allocation8 + $0x1d8] sm:$0xff]  ;;  %v1793_v43 = vpack.c.bf16 %v266_v37, %v262_v32 }
  0x96   :  { %1722 = vmatpush1.bf16.msra.mxu1 %v1721_v6  ;;  %1782 = vmatpush1.bf16.msra.mxu0 %v1781_v7  ;;  %v281_v39 = vld [vmem:[#allocation8 + $0x228] sm:$0xff]  ;;  %v275_v41 = vld [vmem:[#allocation8 + $0x1f8] sm:$0xff]  ;;  %v1733_v42 = vpack.c.bf16 %v272_v35, %v268_v34  ;;  %v270_v44 = vld [vmem:[#allocation8 + $0x1d0] sm:$0xff] }
  0x97   :  { %1724 = vmatprep.subr.bf16.mxu1 %v1723_v9  ;;  %1784 = vmatprep.subr.bf16.mxu0 %v1783_v12  ;;  %v1735_v45 = vpack.c.bf16 %v281_v39, %v277_v38  ;;  %v276_v46 = vld [vmem:[#allocation8 + $0x200] sm:$0xff]  ;;  %v1795_v48 = vpack.c.bf16 %v275_v41, %v271_v40  ;;  %v274_v49 = vld [vmem:[#allocation8 + $0x1f0] sm:$0xff]  ;;  %v285_v50 = vld [vmem:[#allocation8 + $0x248] sm:$0xff] }
  0x98   :  { %v280_v47 = vld [vmem:[#allocation8 + $0x220] sm:$0xff]  ;;  %v289_v51 = vld [vmem:[#allocation8 + $0x268] sm:$0xff]  ;;  %v279_v52 = vld [vmem:[#allocation8 + $0x218] sm:$0xff]  ;;  %v1797_v55 = vpack.c.bf16 %v274_v49, %v270_v44 }
  0x99   :  { %v283_v53 = vld [vmem:[#allocation8 + $0x238] sm:$0xff]  ;;  %v1737_v54 = vpack.c.bf16 %v280_v47, %v276_v46  ;;  %v278_v56 = vld [vmem:[#allocation8 + $0x210] sm:$0xff]  ;;  %v1739_v57 = vpack.c.bf16 %v289_v51, %v285_v50  ;;  %v284_v58 = vld [vmem:[#allocation8 + $0x240] sm:$0xff] }
  0x9a   :  { %1726 = vmatpush1.bf16.msra.mxu1 %v1725_v18  ;;  %1786 = vmatpush1.bf16.msra.mxu0 %v1785_v19  ;;  %v288_v59 = vld [vmem:[#allocation8 + $0x260] sm:$0xff]  ;;  %v1799_v60 = vpack.c.bf16 %v283_v53, %v279_v52  ;;  %v282_v61 = vld [vmem:[#allocation8 + $0x230] sm:$0xff]  ;;  %v293_v62 = vld [vmem:[#allocation8 + $0x288] sm:$0xff] }
  0x9b   :  { %1728 = vmatprep.subr.bf16.mxu1 %v1727_v21  ;;  %1788 = vmatprep.subr.bf16.mxu0 %v1787_v24  ;;  %v297_v63 = vld [vmem:[#allocation8 + $0x2a8] sm:$0xff]  ;;  %v287_v0 = vld [vmem:[#allocation8 + $0x258] sm:$0xff]  ;;  %v1741_v2 = vpack.c.bf16 %v288_v59, %v284_v58  ;;  %v1801_v3 = vpack.c.bf16 %v282_v61, %v278_v56  ;;  %v286_v4 = vld [vmem:[#allocation8 + $0x250] sm:$0xff] }
  0x9c   :  { %v291_v1 = vld [vmem:[#allocation8 + $0x278] sm:$0xff]  ;;  %v1743_v5 = vpack.c.bf16 %v297_v63, %v293_v62  ;;  %v292_v6 = vld [vmem:[#allocation8 + $0x280] sm:$0xff]  ;;  %v290_v9 = vld [vmem:[#allocation8 + $0x270] sm:$0xff] }
  0x9d   :  { %v296_v7 = vld [vmem:[#allocation8 + $0x2a0] sm:$0xff]  ;;  %v1803_v8 = vpack.c.bf16 %v291_v1, %v287_v0  ;;  %v301_v10 = vld [vmem:[#allocation8 + $0x2c8] sm:$0xff]  ;;  %v295_v12 = vld [vmem:[#allocation8 + $0x298] sm:$0xff]  ;;  %v1805_v15 = vpack.c.bf16 %v290_v9, %v286_v4 }
  0x9e   :  { %1730 = vmatpush1.bf16.msra.mxu1 %v1729_v30  ;;  %1790 = vmatpush1.bf16.msra.mxu0 %v1789_v31  ;;  %v305_v11 = vld [vmem:[#allocation8 + $0x2e8] sm:$0xff]  ;;  %v299_v13 = vld [vmem:[#allocation8 + $0x2b8] sm:$0xff]  ;;  %v1745_v14 = vpack.c.bf16 %v296_v7, %v292_v6  ;;  %v294_v16 = vld [vmem:[#allocation8 + $0x290] sm:$0xff] }
  0x9f   :  { %1732 = vmatprep.subr.bf16.mxu1 %v1731_v33  ;;  %1792 = vmatprep.subr.bf16.mxu0 %v1791_v36  ;;  %v1747_v17 = vpack.c.bf16 %v305_v11, %v301_v10  ;;  %v300_v18 = vld [vmem:[#allocation8 + $0x2c0] sm:$0xff]  ;;  %v1807_v20 = vpack.c.bf16 %v299_v13, %v295_v12  ;;  %v298_v21 = vld [vmem:[#allocation8 + $0x2b0] sm:$0xff]  ;;  %v309_v22 = vld [vmem:[#allocation8 + $0x308] sm:$0xff] }
  0xa0   :  { %v304_v19 = vld [vmem:[#allocation8 + $0x2e0] sm:$0xff]  ;;  %v313_v23 = vld [vmem:[#allocation8 + $0x328] sm:$0xff]  ;;  %v303_v24 = vld [vmem:[#allocation8 + $0x2d8] sm:$0xff]  ;;  %v1809_v27 = vpack.c.bf16 %v298_v21, %v294_v16 }
  0xa1   :  { %v307_v25 = vld [vmem:[#allocation8 + $0x2f8] sm:$0xff]  ;;  %v1749_v26 = vpack.c.bf16 %v304_v19, %v300_v18  ;;  %v302_v28 = vld [vmem:[#allocation8 + $0x2d0] sm:$0xff]  ;;  %v1751_v29 = vpack.c.bf16 %v313_v23, %v309_v22  ;;  %v308_v30 = vld [vmem:[#allocation8 + $0x300] sm:$0xff] }
  0xa2   :  { %1734 = vmatpush1.bf16.msra.mxu1 %v1733_v42  ;;  %1794 = vmatpush1.bf16.msra.mxu0 %v1793_v43  ;;  %v312_v31 = vld [vmem:[#allocation8 + $0x320] sm:$0xff]  ;;  %v1811_v32 = vpack.c.bf16 %v307_v25, %v303_v24  ;;  %v306_v33 = vld [vmem:[#allocation8 + $0x2f0] sm:$0xff]  ;;  %v317_v34 = vld [vmem:[#allocation8 + $0x348] sm:$0xff] }
  0xa3   :  { %1736 = vmatprep.subr.bf16.mxu1 %v1735_v45  ;;  %1796 = vmatprep.subr.bf16.mxu0 %v1795_v48  ;;  %v321_v35 = vld [vmem:[#allocation8 + $0x368] sm:$0xff]  ;;  %v311_v36 = vld [vmem:[#allocation8 + $0x318] sm:$0xff]  ;;  %v1753_v38 = vpack.c.bf16 %v312_v31, %v308_v30  ;;  %v1813_v39 = vpack.c.bf16 %v306_v33, %v302_v28  ;;  %v310_v40 = vld [vmem:[#allocation8 + $0x310] sm:$0xff] }
  0xa4   :  { %v315_v37 = vld [vmem:[#allocation8 + $0x338] sm:$0xff]  ;;  %v1755_v41 = vpack.c.bf16 %v321_v35, %v317_v34  ;;  %v316_v42 = vld [vmem:[#allocation8 + $0x340] sm:$0xff]  ;;  %v314_v45 = vld [vmem:[#allocation8 + $0x330] sm:$0xff] }
  0xa5   :  { %v320_v43 = vld [vmem:[#allocation8 + $0x360] sm:$0xff]  ;;  %v1815_v44 = vpack.c.bf16 %v315_v37, %v311_v36  ;;  %v325_v46 = vld [vmem:[#allocation8 + $0x388] sm:$0xff]  ;;  %v319_v48 = vld [vmem:[#allocation8 + $0x358] sm:$0xff]  ;;  %v1817_v51 = vpack.c.bf16 %v314_v45, %v310_v40 }
  0xa6   :  { %1738 = vmatpush1.bf16.msra.mxu1 %v1737_v54  ;;  %1798 = vmatpush1.bf16.msra.mxu0 %v1797_v55  ;;  %v329_v47 = vld [vmem:[#allocation8 + $0x3a8] sm:$0xff]  ;;  %v323_v49 = vld [vmem:[#allocation8 + $0x378] sm:$0xff]  ;;  %v1757_v50 = vpack.c.bf16 %v320_v43, %v316_v42  ;;  %v318_v54 = vld [vmem:[#allocation8 + $0x350] sm:$0xff] }
  0xa7   :  { %1740 = vmatprep.subr.bf16.mxu1 %v1739_v57  ;;  %1800 = vmatprep.subr.bf16.mxu0 %v1799_v60  ;;  %v1759_v52 = vpack.c.bf16 %v329_v47, %v325_v46  ;;  %v1819_v53 = vpack.c.bf16 %v323_v49, %v319_v48  ;;  %v322_v55 = vld [vmem:[#allocation8 + $0x370] sm:$0xff]  ;;  %v327_v56 = vld [vmem:[#allocation8 + $0x398] sm:$0xff]  ;;  %v324_v60 = vld [vmem:[#allocation8 + $0x380] sm:$0xff] }
  0xa8   :  { %v331_v57 = vld [vmem:[#allocation8 + $0x3b8] sm:$0xff]  ;;  %v1821_v58 = vpack.c.bf16 %v322_v55, %v318_v54  ;;  %v328_v61 = vld [vmem:[#allocation8 + $0x3a0] sm:$0xff]  ;;  %v326_v62 = vld [vmem:[#allocation8 + $0x390] sm:$0xff] }
  0xa9   :  { %v1823_v59 = vpack.c.bf16 %v331_v57, %v327_v56  ;;  %v1761_v63 = vpack.c.bf16 %v328_v61, %v324_v60  ;;  %v330_v0 = vld [vmem:[#allocation8 + $0x3b0] sm:$0xff]  ;;  %v335_v4 = vld [vmem:[#allocation8 + $0x3d8] sm:$0xff]  ;;  %v332_v7 = vld [vmem:[#allocation8 + $0x3c0] sm:$0xff] }
  0xaa   :  { %1742 = vmatpush1.bf16.msra.mxu1 %v1741_v2  ;;  %1802 = vmatpush1.bf16.msra.mxu0 %v1801_v3  ;;  %v1825_v1 = vpack.c.bf16 %v330_v0, %v326_v62  ;;  %v333_v2 = vld [vmem:[#allocation8 + $0x3c8] sm:$0xff]  ;;  %v339_v6 = vld [vmem:[#allocation8 + $0x3f8] sm:$0xff]  ;;  %v334_v11 = vld [vmem:[#allocation8 + $0x3d0] sm:$0xff] }
  0xab   :  { %1744 = vmatprep.subr.bf16.mxu1 %v1743_v5  ;;  %1804 = vmatprep.subr.bf16.mxu0 %v1803_v8  ;;  %v337_v3 = vld [vmem:[#allocation8 + $0x3e8] sm:$0xff]  ;;  %v336_v8 = vld [vmem:[#allocation8 + $0x3e0] sm:$0xff]  ;;  %v1827_v9 = vpack.c.bf16 %v339_v6, %v335_v4  ;;  %v338_v12 = vld [vmem:[#allocation8 + $0x3f0] sm:$0xff] }
  0xac   :  { %v1763_v5 = vpack.c.bf16 %v337_v3, %v333_v2  ;;  %v1765_v10 = vpack.c.bf16 %v336_v8, %v332_v7  ;;  %v1829_v13 = vpack.c.bf16 %v338_v12, %v334_v11  ;;  %v511_v16 = vld [vmem:[#allocation11 + $0x18] sm:$0xff]  ;;  %v508_v28 = vld [vmem:[#allocation11] sm:$0xff]  ;;  %v518_v33 = vld [vmem:[#allocation11 + $0x50] sm:$0xff] }
  0xad   :  { %v519_v18 = vld [vmem:[#allocation11 + $0x58] sm:$0xff]  ;;  %v525_v34 = vld [vmem:[#allocation11 + $0x88] sm:$0xff]  ;;  %v524_v42 = vld [vmem:[#allocation11 + $0x80] sm:$0xff] }
  0xae   :  { %1746 = vmatpush1.bf16.msra.mxu1 %v1745_v14  ;;  %1806 = vmatpush1.bf16.msra.mxu0 %v1805_v15  ;;  %v509_v14 = vld [vmem:[#allocation11 + $0x8] sm:$0xff]  ;;  %v1959_v19 = vpack.c.bf16 %v519_v18, %v511_v16  ;;  %v123_v23 = vld [vmem:[#allocation7] sm:$0x3]  ;;  %v532_v43 = vld [vmem:[#allocation11 + $0xc0] sm:$0xff] }
  0xaf   :  { %1748 = vmatprep.subr.bf16.mxu1 %v1747_v17  ;;  %1808 = vmatprep.subr.bf16.mxu0 %v1807_v20  ;;  %v517_v15 = vld [vmem:[#allocation11 + $0x48] sm:$0xff]  ;;  %v125_v20 = vlaneseq  ;;  %v527_v37 = vld [vmem:[#allocation11 + $0x98] sm:$0xff]  ;;  %v526_v47 = vld [vmem:[#allocation11 + $0x90] sm:$0xff] }
  0xb0   :  { %v1831_v17 = vpack.c.bf16 %v517_v15, %v509_v14  ;;  %v533_v36 = vld [vmem:[#allocation11 + $0xc8] sm:$0xff]  ;;  %v534_v48 = vld [vmem:[#allocation11 + $0xd0] sm:$0xff]  ;;  %v540_v55 = vld [vmem:[#allocation11 + $0x100] sm:$0xff] }
  0xb1   :  { %v2701_v21 = vshrl.u32 %v125_v20, 7  ;;  %v1835_v45 = vpack.c.bf16 %v533_v36, %v525_v34  ;;  %v541_v49 = vld [vmem:[#allocation11 + $0x108] sm:$0xff]  ;;  %v1965_v54 = vpack.c.bf16 %v534_v48, %v526_v47  ;;  %v548_v56 = vld [vmem:[#allocation11 + $0x140] sm:$0xff]  ;;  %v550_v60 = vld [vmem:[#allocation11 + $0x150] sm:$0xff] }
  0xb2   :  { %1750 = vmatpush1.bf16.msra.mxu1 %v1749_v26  ;;  %1810 = vmatpush1.bf16.msra.mxu0 %v1809_v27  ;;  %v557_v61 = vld [vmem:[#allocation11 + $0x188] sm:$0xff]  ;;  %v567_v0 = vld [vmem:[#allocation11 + $0x1d8] sm:$0xff]  ;;  %v556_v3 = vld [vmem:[#allocation11 + $0x180] sm:$0xff] }
  0xb3   :  { %1752 = vmatprep.subr.bf16.mxu1 %v1751_v29  ;;  %1812 = vmatprep.subr.bf16.mxu0 %v1811_v32  ;;  %v2704_v22 = vsub.s32 0, %v2701_v21  ;;  %v2707_v24 = vsub.s32 1, %v2701_v21  ;;  %v516_v29 = vld [vmem:[#allocation11 + $0x40] sm:$0xff]  ;;  %v510_v32 = vld [vmem:[#allocation11 + $0x10] sm:$0xff]  ;;  %v565_v62 = vld [vmem:[#allocation11 + $0x1c8] sm:$0xff] }
  0xb4   :  { %v1833_v40 = vpack.c.bf16 %v516_v29, %v508_v28  ;;  %v564_v4 = vld [vmem:[#allocation11 + $0x1c0] sm:$0xff]  ;;  %v558_v7 = vld [vmem:[#allocation11 + $0x190] sm:$0xff]  ;;  %v575_v11 = vld [vmem:[#allocation11 + $0x218] sm:$0xff] }
  0xb5   :  { %v128_v25 = vrot.slane %v123_v23, %v2704_v22  ;;  %v132_v26 = vrot.slane %v123_v23, %v2707_v24  ;;  %v566_v8 = vld [vmem:[#allocation11 + $0x1d0] sm:$0xff]  ;;  %v583_v12 = vld [vmem:[#allocation11 + $0x258] sm:$0xff]  ;;  %v572_v15 = vld [vmem:[#allocation11 + $0x200] sm:$0xff] }
  0xb6   :  { %1754 = vmatpush1.bf16.msra.mxu1 %v1753_v38  ;;  %1814 = vmatpush1.bf16.msra.mxu0 %v1813_v39  ;;  %v535_v38 = vld [vmem:[#allocation11 + $0xd8] sm:$0xff]  ;;  %v1973_v14 = vpack.c.bf16 %v566_v8, %v558_v7  ;;  %v580_v16 = vld [vmem:[#allocation11 + $0x240] sm:$0xff]  ;;  %v1975_v18 = vpack.c.bf16 %v583_v12, %v575_v11  ;;  %v582_v20 = vld [vmem:[#allocation11 + $0x250] sm:$0xff] }
  0xb7   :  { %1756 = vmatprep.subr.bf16.mxu1 %v1755_v41  ;;  %1816 = vmatprep.subr.bf16.mxu0 %v1815_v44  ;;  %v1961_v41 = vpack.c.bf16 %v518_v33, %v510_v32  ;;  %v1963_v46 = vpack.c.bf16 %v535_v38, %v527_v37  ;;  %v589_v23 = vld [vmem:[#allocation11 + $0x288] sm:$0xff]  ;;  %v1849_v28 = vpack.c.bf16 %v580_v16, %v572_v15  ;;  %v590_v34 = vld [vmem:[#allocation11 + $0x290] sm:$0xff]  ;;  %v607_v38 = vld [vmem:[#allocation11 + $0x318] sm:$0xff] }
  0xb8   :  { %v605_v36 = vld [vmem:[#allocation11 + $0x308] sm:$0xff]  ;;  %v614_v47 = vld [vmem:[#allocation11 + $0x350] sm:$0xff]  ;;  %v663_v11 = vld [vmem:[#allocation11 + $0x4d8] sm:$0xff] }
  0xb9   :  { %v613_v37 = vld [vmem:[#allocation11 + $0x348] sm:$0xff]  ;;  %v646_v7 = vld [vmem:[#allocation11 + $0x450] sm:$0xff]  ;;  %v660_v15 = vld [vmem:[#allocation11 + $0x4c0] sm:$0xff] }
  0xba   :  { %1758 = vmatpush1.bf16.msra.mxu1 %v1757_v50  ;;  %1818 = vmatpush1.bf16.msra.mxu0 %v1817_v51  ;;  %v549_v50 = vld [vmem:[#allocation11 + $0x148] sm:$0xff]  ;;  %v543_v51 = vld [vmem:[#allocation11 + $0x118] sm:$0xff] }
  0xbb   :  { %1760 = vmatprep.subr.bf16.mxu1 %v1759_v52  ;;  %1820 = vmatprep.subr.bf16.mxu0 %v1819_v53  ;;  %v551_v52 = vld [vmem:[#allocation11 + $0x158] sm:$0xff]  ;;  %v1837_v53 = vpack.c.bf16 %v532_v43, %v524_v42  ;;  %v1839_v57 = vpack.c.bf16 %v549_v50, %v541_v49  ;;  %v604_v42 = vld [vmem:[#allocation11 + $0x300] sm:$0xff]  ;;  %v621_v48 = vld [vmem:[#allocation11 + $0x388] sm:$0xff] }
  0xbc   :  { %v612_v43 = vld [vmem:[#allocation11 + $0x340] sm:$0xff]  ;;  %v629_v49 = vld [vmem:[#allocation11 + $0x3c8] sm:$0xff]  ;;  %v623_v50 = vld [vmem:[#allocation11 + $0x398] sm:$0xff] }
  0xbd   :  { %v653_v8 = vld [vmem:[#allocation11 + $0x488] sm:$0xff] }
  0xbe   :  { %1822 = vmatpush1.bf16.msra.mxu0 %v1821_v58  ;;  %1762 = vmatpush1.bf16.msra.mxu1 %v1761_v63  ;;  %v1967_v58 = vpack.c.bf16 %v551_v52, %v543_v51  ;;  %v559_v63 = vld [vmem:[#allocation11 + $0x198] sm:$0xff]  ;;  %v1857_v52 = vpack.c.bf16 %v612_v43, %v604_v42  ;;  %v692_v42 = vld [vmem:[#allocation11 + $0x5c0] sm:$0xff] }
  0xbf   :  { %1824 = vmatprep.subr.bf16.mxu0 %v1823_v59  ;;  %1764 = vmatprep.subr.bf16.mxu1 %v1763_v5  ;;  %v542_v59 = vld [vmem:[#allocation11 + $0x110] sm:$0xff]  ;;  %v1843_v5 = vpack.c.bf16 %v565_v62, %v557_v61  ;;  %v1971_v6 = vpack.c.bf16 %v567_v0, %v559_v63  ;;  %v631_v51 = vld [vmem:[#allocation11 + $0x3d8] sm:$0xff]  ;;  %v645_v61 = vld [vmem:[#allocation11 + $0x448] sm:$0xff] }
  0xc0   :  { %v1969_v2 = vpack.c.bf16 %v550_v60, %v542_v59  ;;  %v630_v59 = vld [vmem:[#allocation11 + $0x3d0] sm:$0xff]  ;;  %v637_v60 = vld [vmem:[#allocation11 + $0x408] sm:$0xff]  ;;  %v639_v62 = vld [vmem:[#allocation11 + $0x418] sm:$0xff] }
  0xc1   :  { %v647_v63 = vld [vmem:[#allocation11 + $0x458] sm:$0xff] }
  0xc2   :  { %1826 = vmatpush1.bf16.msra.mxu0 %v1825_v1  ;;  %1766 = vmatpush1.bf16.msra.mxu1 %v1765_v10  ;;  %v1841_v1 = vpack.c.bf16 %v548_v56, %v540_v55  ;;  %v581_v10 = vld [vmem:[#allocation11 + $0x248] sm:$0xff]  ;;  %v628_v55 = vld [vmem:[#allocation11 + $0x3c0] sm:$0xff]  ;;  %v1859_v56 = vpack.c.bf16 %v629_v49, %v621_v48  ;;  %v703_v49 = vld [vmem:[#allocation11 + $0x618] sm:$0xff] }
  0xc3   :  { %1828 = vmatprep.subr.bf16.mxu0 %v1827_v9  ;;  %1832 = vmatprep.subr.bf16.mxu1 %v1831_v17  ;;  %v573_v9 = vld [vmem:[#allocation11 + $0x208] sm:$0xff] }
  0xc4   :  { %v1847_v17 = vpack.c.bf16 %v581_v10, %v573_v9  ;;  %v661_v9 = vld [vmem:[#allocation11 + $0x4c8] sm:$0xff]  ;;  %v655_v10 = vld [vmem:[#allocation11 + $0x498] sm:$0xff] }
  0xc5   :  { %v1867_v16 = vpack.c.bf16 %v661_v9, %v653_v8  ;;  %v709_v48 = vld [vmem:[#allocation11 + $0x648] sm:$0xff]  ;;  %v735_v9 = vld [vmem:[#allocation11 + $0x718] sm:$0xff] }
  0xc6   :  { %1830 = vmatpush1.bf16.msra.mxu0 %v1829_v13  ;;  %v1845_v13 = vpack.c.bf16 %v564_v4, %v556_v3  ;;  %v644_v3 = vld [vmem:[#allocation11 + $0x440] sm:$0xff]  ;;  %v1863_v4 = vpack.c.bf16 %v645_v61, %v637_v60  ;;  %v725_v60 = vld [vmem:[#allocation11 + $0x6c8] sm:$0xff]  ;;  %v719_v61 = vld [vmem:[#allocation11 + $0x698] sm:$0xff] }
  0xc7   :  { %1960 = vmatprep.subr.bf16.mxu0 %v1959_v19  ;;  %v574_v19 = vld [vmem:[#allocation11 + $0x210] sm:$0xff]  ;;  %v741_v8 = vld [vmem:[#allocation11 + $0x748] sm:$0xff] }
  0xc8   :  { %v1977_v29 = vpack.c.bf16 %v582_v20, %v574_v19  ;;  %v662_v19 = vld [vmem:[#allocation11 + $0x4d0] sm:$0xff]  ;;  %v669_v20 = vld [vmem:[#allocation11 + $0x508] sm:$0xff] }
 0x15c   :  { %v205_v27 = vpop.f32.mrb[0].mxu0 }
 0x15d   :  { %v206_v30 = vadd.f32 %v205_v27, %v128_v25  ;;  %v207_v31 = vpop.f32.mrb[1].mxu0  ;;  %v597_v25 = vld [vmem:[#allocation11 + $0x2c8] sm:$0xff]  ;;  %v599_v27 = vld [vmem:[#allocation11 + $0x2d8] sm:$0xff] }
 0x15e   :  { %v208_v35 = vadd.f32 %v207_v31, %v132_v26  ;;  %v591_v26 = vld [vmem:[#allocation11 + $0x298] sm:$0xff]  ;;  %v596_v31 = vld [vmem:[#allocation11 + $0x2c0] sm:$0xff]  ;;  %v1851_v32 = vpack.c.bf16 %v597_v25, %v589_v23  ;;  %v677_v23 = vld [vmem:[#allocation11 + $0x548] sm:$0xff] }
 0x15f   :  { %v210_v44 = vmax.f32 %v206_v30, 0.0  ;;  %v588_v30 = vld [vmem:[#allocation11 + $0x280] sm:$0xff]  ;;  %v1979_v33 = vpack.c.bf16 %v599_v27, %v591_v26  ;;  %v671_v25 = vld [vmem:[#allocation11 + $0x518] sm:$0xff] }
 0x160   :  { %v211_v39 = vmax.f32 %v208_v35, 0.0  ;;  %v598_v35 = vld [vmem:[#allocation11 + $0x2d0] sm:$0xff]  ;;  %v679_v26 = vld [vmem:[#allocation11 + $0x558] sm:$0xff] }
 0x162   :  { %426 = vmatprep.mubr.f32.mxu1 %v211_v39  ;;  %497 = vmatprep.mubr.f32.mxu0 %v211_v39  ;;  %v615_v39 = vld [vmem:[#allocation11 + $0x358] sm:$0xff] }
 0x163   :  { %427 = vmatmul.mubr.f32.vlgmr.msra.gmra.mrb[0].mxu1 %v210_v44  ;;  %498 = vmatmul.mubr.f32.vlgmr.msra.gmra.mrb[2].mxu0 %v210_v44  ;;  %v1855_v44 = vpack.c.bf16 %v613_v37, %v605_v36  ;;  %v693_v36 = vld [vmem:[#allocation11 + $0x5c8] sm:$0xff]  ;;  %v687_v37 = vld [vmem:[#allocation11 + $0x598] sm:$0xff] }
 0x164   :  { %1834 = vmatpush1.bf16.msra.mxu1 %v1833_v40  ;;  %1962 = vmatpush1.bf16.msra.mxu0 %v1961_v41  ;;  %v1853_v40 = vpack.c.bf16 %v596_v31, %v588_v30  ;;  %v1981_v41 = vpack.c.bf16 %v598_v35, %v590_v34  ;;  %v676_v30 = vld [vmem:[#allocation11 + $0x540] sm:$0xff]  ;;  %v1871_v31 = vpack.c.bf16 %v677_v23, %v669_v20  ;;  %v678_v34 = vld [vmem:[#allocation11 + $0x550] sm:$0xff]  ;;  %v685_v35 = vld [vmem:[#allocation11 + $0x588] sm:$0xff] }
 0x165   :  { %1836 = vmatprep.subr.bf16.mxu1 %v1835_v45  ;;  %1964 = vmatprep.subr.bf16.mxu0 %v1963_v46  ;;  %v1983_v45 = vpack.c.bf16 %v615_v39, %v607_v38  ;;  %v606_v46 = vld [vmem:[#allocation11 + $0x310] sm:$0xff]  ;;  %v695_v38 = vld [vmem:[#allocation11 + $0x5d8] sm:$0xff]  ;;  %v1875_v43 = vpack.c.bf16 %v693_v36, %v685_v35  ;;  %v749_v23 = vld [vmem:[#allocation11 + $0x788] sm:$0xff] }
 0x166   :  { %v765_v36 = vld [vmem:[#allocation11 + $0x808] sm:$0xff] }
 0x168   :  { %1838 = vmatpush1.bf16.msra.mxu1 %v1837_v53  ;;  %1966 = vmatpush1.bf16.msra.mxu0 %v1965_v54  ;;  %v1985_v53 = vpack.c.bf16 %v614_v47, %v606_v46  ;;  %v620_v54 = vld [vmem:[#allocation11 + $0x380] sm:$0xff]  ;;  %v694_v46 = vld [vmem:[#allocation11 + $0x5d0] sm:$0xff]  ;;  %v701_v47 = vld [vmem:[#allocation11 + $0x608] sm:$0xff] }
 0x169   :  { %1840 = vmatprep.subr.bf16.mxu1 %v1839_v57  ;;  %1968 = vmatprep.subr.bf16.mxu0 %v1967_v58  ;;  %v1987_v57 = vpack.c.bf16 %v631_v51, %v623_v50  ;;  %v622_v58 = vld [vmem:[#allocation11 + $0x390] sm:$0xff]  ;;  %v1861_v0 = vpack.c.bf16 %v628_v55, %v620_v54  ;;  %v711_v50 = vld [vmem:[#allocation11 + $0x658] sm:$0xff]  ;;  %v708_v54 = vld [vmem:[#allocation11 + $0x640] sm:$0xff]  ;;  %v1879_v55 = vpack.c.bf16 %v709_v48, %v701_v47 }
 0x16c   :  { %1842 = vmatpush1.bf16.msra.mxu1 %v1841_v1  ;;  %1970 = vmatpush1.bf16.msra.mxu0 %v1969_v2  ;;  %v1989_v1 = vpack.c.bf16 %v630_v59, %v622_v58  ;;  %v636_v2 = vld [vmem:[#allocation11 + $0x400] sm:$0xff]  ;;  %v710_v58 = vld [vmem:[#allocation11 + $0x650] sm:$0xff]  ;;  %v717_v59 = vld [vmem:[#allocation11 + $0x688] sm:$0xff] }
 0x16d   :  { %1844 = vmatprep.subr.bf16.mxu1 %v1843_v5  ;;  %1972 = vmatprep.subr.bf16.mxu0 %v1971_v6  ;;  %v1991_v5 = vpack.c.bf16 %v647_v63, %v639_v62  ;;  %v638_v6 = vld [vmem:[#allocation11 + $0x410] sm:$0xff]  ;;  %v1865_v12 = vpack.c.bf16 %v644_v3, %v636_v2  ;;  %v727_v62 = vld [vmem:[#allocation11 + $0x6d8] sm:$0xff]  ;;  %v724_v2 = vld [vmem:[#allocation11 + $0x6c0] sm:$0xff]  ;;  %v1883_v3 = vpack.c.bf16 %v725_v60, %v717_v59 }
 0x16e   :  { %v789_v59 = vld [vmem:[#allocation11 + $0x8c8] sm:$0xff]  ;;  %v783_v60 = vld [vmem:[#allocation11 + $0x898] sm:$0xff] }
 0x170   :  { %1846 = vmatpush1.bf16.msra.mxu1 %v1845_v13  ;;  %1974 = vmatpush1.bf16.msra.mxu0 %v1973_v14  ;;  %v1993_v13 = vpack.c.bf16 %v646_v7, %v638_v6  ;;  %v652_v14 = vld [vmem:[#allocation11 + $0x480] sm:$0xff]  ;;  %v726_v6 = vld [vmem:[#allocation11 + $0x6d0] sm:$0xff]  ;;  %v733_v7 = vld [vmem:[#allocation11 + $0x708] sm:$0xff] }
 0x171   :  { %1848 = vmatprep.subr.bf16.mxu1 %v1847_v17  ;;  %1976 = vmatprep.subr.bf16.mxu0 %v1975_v18  ;;  %v1995_v17 = vpack.c.bf16 %v663_v11, %v655_v10  ;;  %v654_v18 = vld [vmem:[#allocation11 + $0x490] sm:$0xff]  ;;  %v1869_v27 = vpack.c.bf16 %v660_v15, %v652_v14  ;;  %v743_v10 = vld [vmem:[#allocation11 + $0x758] sm:$0xff]  ;;  %v1887_v14 = vpack.c.bf16 %v741_v8, %v733_v7 }
 0x172   :  { %v2015_v15 = vpack.c.bf16 %v743_v10, %v735_v9  ;;  %v805_v9 = vld [vmem:[#allocation11 + $0x948] sm:$0xff]  ;;  %v799_v10 = vld [vmem:[#allocation11 + $0x918] sm:$0xff] }
 0x174   :  { %1850 = vmatpush1.bf16.msra.mxu1 %v1849_v28  ;;  %1978 = vmatpush1.bf16.msra.mxu0 %v1977_v29  ;;  %v1997_v28 = vpack.c.bf16 %v662_v19, %v654_v18  ;;  %v668_v29 = vld [vmem:[#allocation11 + $0x500] sm:$0xff]  ;;  %v742_v18 = vld [vmem:[#allocation11 + $0x750] sm:$0xff] }
 0x175   :  { %1852 = vmatprep.subr.bf16.mxu1 %v1851_v32  ;;  %1980 = vmatprep.subr.bf16.mxu0 %v1979_v33  ;;  %v1999_v32 = vpack.c.bf16 %v679_v26, %v671_v25  ;;  %v670_v33 = vld [vmem:[#allocation11 + $0x510] sm:$0xff]  ;;  %v1873_v39 = vpack.c.bf16 %v676_v30, %v668_v29  ;;  %v757_v25 = vld [vmem:[#allocation11 + $0x7c8] sm:$0xff]  ;;  %v751_v26 = vld [vmem:[#allocation11 + $0x798] sm:$0xff] }
 0x176   :  { %v748_v29 = vld [vmem:[#allocation11 + $0x780] sm:$0xff] }
 0x177   :  { %v756_v30 = vld [vmem:[#allocation11 + $0x7c0] sm:$0xff] }
 0x178   :  { %1854 = vmatpush1.bf16.msra.mxu1 %v1853_v40  ;;  %1982 = vmatpush1.bf16.msra.mxu0 %v1981_v41  ;;  %v2001_v40 = vpack.c.bf16 %v678_v34, %v670_v33  ;;  %v684_v41 = vld [vmem:[#allocation11 + $0x580] sm:$0xff]  ;;  %v750_v33 = vld [vmem:[#allocation11 + $0x790] sm:$0xff] }
 0x179   :  { %1856 = vmatprep.subr.bf16.mxu1 %v1855_v44  ;;  %1984 = vmatprep.subr.bf16.mxu0 %v1983_v45  ;;  %v2003_v44 = vpack.c.bf16 %v695_v38, %v687_v37  ;;  %v686_v45 = vld [vmem:[#allocation11 + $0x590] sm:$0xff]  ;;  %v1877_v51 = vpack.c.bf16 %v692_v42, %v684_v41  ;;  %v773_v37 = vld [vmem:[#allocation11 + $0x848] sm:$0xff]  ;;  %v767_v38 = vld [vmem:[#allocation11 + $0x818] sm:$0xff] }
 0x17a   :  { %v758_v34 = vld [vmem:[#allocation11 + $0x7d0] sm:$0xff]  ;;  %v2711_v42 = vld [vmem:[#allocation10] sm:$0xf] }
 0x17b   :  { %v2021_v35 = vpack.c.bf16 %v758_v34, %v750_v33  ;;  %v814_v34 = vld [vmem:[#allocation11 + $0x990] sm:$0xff] }
 0x17c   :  { %1858 = vmatpush1.bf16.msra.mxu1 %v1857_v52  ;;  %1986 = vmatpush1.bf16.msra.mxu0 %v1985_v53  ;;  %v2005_v52 = vpack.c.bf16 %v694_v46, %v686_v45  ;;  %v700_v53 = vld [vmem:[#allocation11 + $0x600] sm:$0xff]  ;;  %v349_v45 = vrot.slane %v2711_v42, %v2707_v24 }
 0x17d   :  { %1860 = vmatprep.subr.bf16.mxu1 %v1859_v56  ;;  %1988 = vmatprep.subr.bf16.mxu0 %v1987_v57  ;;  %v2007_v56 = vpack.c.bf16 %v711_v50, %v703_v49  ;;  %v702_v57 = vld [vmem:[#allocation11 + $0x610] sm:$0xff]  ;;  %v1881_v63 = vpack.c.bf16 %v708_v54, %v700_v53  ;;  %v764_v49 = vld [vmem:[#allocation11 + $0x800] sm:$0xff] }
 0x17e   :  { %v772_v53 = vld [vmem:[#allocation11 + $0x840] sm:$0xff]  ;;  %v766_v54 = vld [vmem:[#allocation11 + $0x810] sm:$0xff] }
 0x180   :  { %1862 = vmatpush1.bf16.msra.mxu1 %v1861_v0  ;;  %1990 = vmatpush1.bf16.msra.mxu0 %v1989_v1  ;;  %v2009_v0 = vpack.c.bf16 %v710_v58, %v702_v57  ;;  %v716_v1 = vld [vmem:[#allocation11 + $0x680] sm:$0xff]  ;;  %v781_v57 = vld [vmem:[#allocation11 + $0x888] sm:$0xff] }
 0x181   :  { %1864 = vmatprep.subr.bf16.mxu1 %v1863_v4  ;;  %1992 = vmatprep.subr.bf16.mxu0 %v1991_v5  ;;  %v2011_v4 = vpack.c.bf16 %v727_v62, %v719_v61  ;;  %v718_v5 = vld [vmem:[#allocation11 + $0x690] sm:$0xff]  ;;  %v1885_v11 = vpack.c.bf16 %v724_v2, %v716_v1  ;;  %v791_v61 = vld [vmem:[#allocation11 + $0x8d8] sm:$0xff]  ;;  %v780_v1 = vld [vmem:[#allocation11 + $0x880] sm:$0xff]  ;;  %v1899_v7 = vpack.c.bf16 %v789_v59, %v781_v57 }
 0x182   :  { %v788_v2 = vld [vmem:[#allocation11 + $0x8c0] sm:$0xff]  ;;  %v2027_v8 = vpack.c.bf16 %v791_v61, %v783_v60  ;;  %v846_v61 = vld [vmem:[#allocation11 + $0xa90] sm:$0xff] }
 0x183   :  { %v844_v57 = vld [vmem:[#allocation11 + $0xa80] sm:$0xff] }
 0x184   :  { %1866 = vmatpush1.bf16.msra.mxu1 %v1865_v12  ;;  %1994 = vmatpush1.bf16.msra.mxu0 %v1993_v13  ;;  %v2013_v12 = vpack.c.bf16 %v726_v6, %v718_v5  ;;  %v732_v13 = vld [vmem:[#allocation11 + $0x700] sm:$0xff]  ;;  %v790_v5 = vld [vmem:[#allocation11 + $0x8d0] sm:$0xff]  ;;  %v797_v6 = vld [vmem:[#allocation11 + $0x908] sm:$0xff] }
 0x185   :  { %1868 = vmatprep.subr.bf16.mxu1 %v1867_v16  ;;  %1996 = vmatprep.subr.bf16.mxu0 %v1995_v17  ;;  %v740_v16 = vld [vmem:[#allocation11 + $0x740] sm:$0xff]  ;;  %v734_v17 = vld [vmem:[#allocation11 + $0x710] sm:$0xff] }
 0x186   :  { %v1889_v19 = vpack.c.bf16 %v740_v16, %v732_v13  ;;  %v2017_v20 = vpack.c.bf16 %v742_v18, %v734_v17  ;;  %v1901_v13 = vpack.c.bf16 %v788_v2, %v780_v1  ;;  %v804_v16 = vld [vmem:[#allocation11 + $0x940] sm:$0xff]  ;;  %v1903_v17 = vpack.c.bf16 %v805_v9, %v797_v6  ;;  %v869_v1 = vld [vmem:[#allocation11 + $0xb48] sm:$0xff]  ;;  %v863_v2 = vld [vmem:[#allocation11 + $0xb18] sm:$0xff] }
 0x188   :  { %1870 = vmatpush1.bf16.msra.mxu1 %v1869_v27  ;;  %1998 = vmatpush1.bf16.msra.mxu0 %v1997_v28  ;;  %v1891_v27 = vpack.c.bf16 %v757_v25, %v749_v23  ;;  %v759_v28 = vld [vmem:[#allocation11 + $0x7d8] sm:$0xff]  ;;  %v813_v23 = vld [vmem:[#allocation11 + $0x988] sm:$0xff] }
 0x189   :  { %1872 = vmatprep.subr.bf16.mxu1 %v1871_v31  ;;  %2000 = vmatprep.subr.bf16.mxu0 %v1999_v32  ;;  %v2019_v31 = vpack.c.bf16 %v759_v28, %v751_v26  ;;  %v1893_v32 = vpack.c.bf16 %v756_v30, %v748_v29  ;;  %v821_v25 = vld [vmem:[#allocation11 + $0x9c8] sm:$0xff]  ;;  %v815_v26 = vld [vmem:[#allocation11 + $0x998] sm:$0xff]  ;;  %v812_v30 = vld [vmem:[#allocation11 + $0x980] sm:$0xff] }
 0x18c   :  { %1874 = vmatpush1.bf16.msra.mxu1 %v1873_v39  ;;  %2002 = vmatpush1.bf16.msra.mxu0 %v2001_v40  ;;  %v1895_v39 = vpack.c.bf16 %v773_v37, %v765_v36  ;;  %v775_v40 = vld [vmem:[#allocation11 + $0x858] sm:$0xff]  ;;  %v829_v36 = vld [vmem:[#allocation11 + $0xa08] sm:$0xff] }
 0x18d   :  { %1876 = vmatprep.subr.bf16.mxu1 %v1875_v43  ;;  %2004 = vmatprep.subr.bf16.mxu0 %v2003_v44  ;;  %v2023_v41 = vpack.c.bf16 %v775_v40, %v767_v38  ;;  %v356_v43 = vsub.s32 3, %v2701_v21  ;;  %v345_v44 = vrot.slane %v2711_v42, %v2704_v22  ;;  %v837_v37 = vld [vmem:[#allocation11 + $0xa48] sm:$0xff]  ;;  %v831_v38 = vld [vmem:[#allocation11 + $0xa18] sm:$0xff] }
 0x18f   :  { %v357_v46 = vrot.slane %v2711_v42, %v356_v43 }
 0x190   :  { %1878 = vmatpush1.bf16.msra.mxu1 %v1877_v51  ;;  %2006 = vmatpush1.bf16.msra.mxu0 %v2005_v52 }
 0x191   :  { %1880 = vmatprep.subr.bf16.mxu1 %v1879_v55  ;;  %2008 = vmatprep.subr.bf16.mxu0 %v2007_v56  ;;  %v774_v55 = vld [vmem:[#allocation11 + $0x850] sm:$0xff] }
 0x194   :  { %1882 = vmatpush1.bf16.msra.mxu1 %v1881_v63  ;;  %2010 = vmatpush1.bf16.msra.mxu0 %v2009_v0  ;;  %v1897_v63 = vpack.c.bf16 %v772_v53, %v764_v49  ;;  %v2025_v0 = vpack.c.bf16 %v774_v55, %v766_v54  ;;  %v830_v49 = vld [vmem:[#allocation11 + $0xa10] sm:$0xff]  ;;  %v847_v53 = vld [vmem:[#allocation11 + $0xa98] sm:$0xff] }
 0x195   :  { %1884 = vmatprep.subr.bf16.mxu1 %v1883_v3  ;;  %2012 = vmatprep.subr.bf16.mxu0 %v2011_v4  ;;  %v782_v4 = vld [vmem:[#allocation11 + $0x890] sm:$0xff]  ;;  %v855_v54 = vld [vmem:[#allocation11 + $0xad8] sm:$0xff] }
 0x196   :  { %v2043_v60 = vpack.c.bf16 %v855_v54, %v847_v53  ;;  %v910_v54 = vld [vmem:[#allocation11 + $0xc90] sm:$0xff] }
 0x198   :  { %1886 = vmatpush1.bf16.msra.mxu1 %v1885_v11  ;;  %2014 = vmatpush1.bf16.msra.mxu0 %v2013_v12  ;;  %v807_v11 = vld [vmem:[#allocation11 + $0x958] sm:$0xff] }
 0x199   :  { %1888 = vmatprep.subr.bf16.mxu1 %v1887_v14  ;;  %2016 = vmatprep.subr.bf16.mxu0 %v2015_v15  ;;  %v2029_v14 = vpack.c.bf16 %v790_v5, %v782_v4  ;;  %v796_v15 = vld [vmem:[#allocation11 + $0x900] sm:$0xff]  ;;  %v2031_v18 = vpack.c.bf16 %v807_v11, %v799_v10  ;;  %v871_v4 = vld [vmem:[#allocation11 + $0xb58] sm:$0xff]  ;;  %v862_v11 = vld [vmem:[#allocation11 + $0xb10] sm:$0xff] }
 0x19a   :  { %v1905_v28 = vpack.c.bf16 %v804_v16, %v796_v15  ;;  %v2047_v10 = vpack.c.bf16 %v871_v4, %v863_v2  ;;  %v885_v15 = vld [vmem:[#allocation11 + $0xbc8] sm:$0xff]  ;;  %v879_v16 = vld [vmem:[#allocation11 + $0xb98] sm:$0xff]  ;;  %v926_v4 = vld [vmem:[#allocation11 + $0xd10] sm:$0xff] }
 0x19c   :  { %1890 = vmatpush1.bf16.msra.mxu1 %v1889_v19  ;;  %2018 = vmatpush1.bf16.msra.mxu0 %v2017_v20  ;;  %v798_v19 = vld [vmem:[#allocation11 + $0x910] sm:$0xff] }
 0x19d   :  { %1892 = vmatprep.subr.bf16.mxu1 %v1891_v27  ;;  %2020 = vmatprep.subr.bf16.mxu0 %v2019_v31  ;;  %v806_v20 = vld [vmem:[#allocation11 + $0x950] sm:$0xff]  ;;  %v823_v27 = vld [vmem:[#allocation11 + $0x9d8] sm:$0xff]  ;;  %v820_v31 = vld [vmem:[#allocation11 + $0x9c0] sm:$0xff] }
 0x19e   :  { %v2033_v29 = vpack.c.bf16 %v806_v20, %v798_v19  ;;  %v2035_v33 = vpack.c.bf16 %v823_v27, %v815_v26  ;;  %v1909_v40 = vpack.c.bf16 %v820_v31, %v812_v30  ;;  %v876_v20 = vld [vmem:[#allocation11 + $0xb80] sm:$0xff]  ;;  %v878_v27 = vld [vmem:[#allocation11 + $0xb90] sm:$0xff]  ;;  %v901_v30 = vld [vmem:[#allocation11 + $0xc48] sm:$0xff] }
 0x19f   :  { %v895_v31 = vld [vmem:[#allocation11 + $0xc18] sm:$0xff] }
 0x1a0   :  { %1894 = vmatpush1.bf16.msra.mxu1 %v1893_v32  ;;  %2022 = vmatpush1.bf16.msra.mxu0 %v2021_v35  ;;  %v1907_v32 = vpack.c.bf16 %v821_v25, %v813_v23  ;;  %v822_v35 = vld [vmem:[#allocation11 + $0x9d0] sm:$0xff]  ;;  %v884_v23 = vld [vmem:[#allocation11 + $0xbc0] sm:$0xff] }
 0x1a1   :  { %1896 = vmatprep.subr.bf16.mxu1 %v1895_v39  ;;  %2024 = vmatprep.subr.bf16.mxu0 %v2023_v41  ;;  %v839_v39 = vld [vmem:[#allocation11 + $0xa58] sm:$0xff]  ;;  %v2037_v41 = vpack.c.bf16 %v822_v35, %v814_v34  ;;  %v892_v35 = vld [vmem:[#allocation11 + $0xc00] sm:$0xff] }
 0x236   :  { %v428_v47 = vpop.f32.mrb[0].mxu1  ;;  %v2721_v48 = vpop.f32.mrb[2].mxu0 }
 0x237   :  { %v429_v50 = vadd.f32 %v428_v47, %v345_v44  ;;  %v430_v51 = vpop.f32.mrb[1].mxu1  ;;  %v501_v52 = vpop.f32.mrb[3].mxu0  ;;  %v828_v44 = vld [vmem:[#allocation11 + $0xa00] sm:$0xff]  ;;  %v2039_v47 = vpack.c.bf16 %v839_v39, %v831_v38  ;;  %v894_v39 = vld [vmem:[#allocation11 + $0xc10] sm:$0xff] }
 0x238   :  { %v431_v56 = vadd.f32 %v430_v51, %v349_v45  ;;  %v502_v58 = vadd.f32 %v501_v52, %v357_v46  ;;  %v836_v45 = vld [vmem:[#allocation11 + $0xa40] sm:$0xff]  ;;  %v1911_v46 = vpack.c.bf16 %v837_v37, %v829_v36  ;;  %v845_v51 = vld [vmem:[#allocation11 + $0xa88] sm:$0xff] }
 0x239   :  { %v2725_v3 = vmax.f32 %v429_v50, 0.0  ;;  %v838_v50 = vld [vmem:[#allocation11 + $0xa50] sm:$0xff]  ;;  %v853_v52 = vld [vmem:[#allocation11 + $0xac8] sm:$0xff]  ;;  %v1913_v55 = vpack.c.bf16 %v836_v45, %v828_v44  ;;  %v900_v36 = vld [vmem:[#allocation11 + $0xc40] sm:$0xff] }
 0x23a   :  { %v2723_v62 = vmax.f32 %v431_v56, 0.0  ;;  %v2729_v12 = vmax.f32 %v502_v58, 0.0  ;;  %v2041_v56 = vpack.c.bf16 %v838_v50, %v830_v49  ;;  %v852_v58 = vld [vmem:[#allocation11 + $0xac0] sm:$0xff]  ;;  %v1915_v59 = vpack.c.bf16 %v853_v52, %v845_v51  ;;  %v917_v44 = vld [vmem:[#allocation11 + $0xcc8] sm:$0xff]  ;;  %v911_v45 = vld [vmem:[#allocation11 + $0xc98] sm:$0xff] }
 0x23b   :  { %v1917_v5 = vpack.c.bf16 %v852_v58, %v844_v57  ;;  %v908_v50 = vld [vmem:[#allocation11 + $0xc80] sm:$0xff]  ;;  %v933_v57 = vld [vmem:[#allocation11 + $0xd48] sm:$0xff]  ;;  %v927_v58 = vld [vmem:[#allocation11 + $0xd18] sm:$0xff] }
 0x23c   :  { %1126 = vmatprep.mubr.f32.mxu1 %v2723_v62  ;;  %1268 = vmatprep.mubr.f32.mxu0 %v2723_v62  ;;  %v916_v51 = vld [vmem:[#allocation11 + $0xcc0] sm:$0xff] }
 0x23d   :  { %1127 = vmatmul.mubr.f32.vlgmr.msra.gmra.mrb[2].mxu1 %v2725_v3  ;;  %1269 = vmatmul.mubr.f32.vlgmr.msra.gmra.mrb[4].mxu0 %v2725_v3 }
 0x23e   :  { %1898 = vmatpush1.bf16.msra.mxu1 %v1897_v63  ;;  %2026 = vmatpush1.bf16.msra.mxu0 %v2025_v0  ;;  %v854_v63 = vld [vmem:[#allocation11 + $0xad0] sm:$0xff]  ;;  %v861_v0 = vld [vmem:[#allocation11 + $0xb08] sm:$0xff] }
 0x23f   :  { %1197 = vmatprep.mubr.f32.mxu1 %v2729_v12  ;;  %1339 = vmatprep.mubr.f32.mxu0 %v2729_v12  ;;  %v2045_v6 = vpack.c.bf16 %v854_v63, %v846_v61  ;;  %v1919_v9 = vpack.c.bf16 %v869_v1, %v861_v0  ;;  %v924_v63 = vld [vmem:[#allocation11 + $0xd00] sm:$0xff] }
 0x240   :  { %1900 = vmatprep.subr.bf16.mxu1 %v1899_v7  ;;  %2028 = vmatprep.subr.bf16.mxu0 %v2027_v8  ;;  %v860_v7 = vld [vmem:[#allocation11 + $0xb00] sm:$0xff] }
 0x241   :  { %v868_v8 = vld [vmem:[#allocation11 + $0xb40] sm:$0xff] }
 0x242   :  { %1902 = vmatpush1.bf16.msra.mxu1 %v1901_v13  ;;  %2030 = vmatpush1.bf16.msra.mxu0 %v2029_v14  ;;  %v870_v13 = vld [vmem:[#allocation11 + $0xb50] sm:$0xff]  ;;  %v877_v14 = vld [vmem:[#allocation11 + $0xb88] sm:$0xff]  ;;  %v932_v0 = vld [vmem:[#allocation11 + $0xd40] sm:$0xff] }
 0x243   :  { %1904 = vmatprep.subr.bf16.mxu1 %v1903_v17  ;;  %2032 = vmatprep.subr.bf16.mxu0 %v2031_v18  ;;  %v887_v17 = vld [vmem:[#allocation11 + $0xbd8] sm:$0xff]  ;;  %v1921_v18 = vpack.c.bf16 %v868_v8, %v860_v7  ;;  %v2049_v19 = vpack.c.bf16 %v870_v13, %v862_v11  ;;  %v1923_v25 = vpack.c.bf16 %v885_v15, %v877_v14  ;;  %v949_v7 = vld [vmem:[#allocation11 + $0xdc8] sm:$0xff]  ;;  %v940_v13 = vld [vmem:[#allocation11 + $0xd80] sm:$0xff] }
 0x244   :  { %v2051_v26 = vpack.c.bf16 %v887_v17, %v879_v16  ;;  %v943_v8 = vld [vmem:[#allocation11 + $0xd98] sm:$0xff]  ;;  %v948_v14 = vld [vmem:[#allocation11 + $0xdc0] sm:$0xff]  ;;  %v942_v17 = vld [vmem:[#allocation11 + $0xd90] sm:$0xff] }
 0x246   :  { %1906 = vmatpush1.bf16.msra.mxu1 %v1905_v28  ;;  %2034 = vmatpush1.bf16.msra.mxu0 %v2033_v29  ;;  %v886_v28 = vld [vmem:[#allocation11 + $0xbd0] sm:$0xff]  ;;  %v893_v29 = vld [vmem:[#allocation11 + $0xc08] sm:$0xff] }
 0x247   :  { %1908 = vmatprep.subr.bf16.mxu1 %v1907_v32  ;;  %2036 = vmatprep.subr.bf16.mxu0 %v2035_v33  ;;  %v903_v32 = vld [vmem:[#allocation11 + $0xc58] sm:$0xff]  ;;  %v1925_v33 = vpack.c.bf16 %v884_v23, %v876_v20  ;;  %v2053_v34 = vpack.c.bf16 %v886_v28, %v878_v27  ;;  %v1927_v37 = vpack.c.bf16 %v901_v30, %v893_v29  ;;  %v965_v20 = vld [vmem:[#allocation11 + $0xe48] sm:$0xff]  ;;  %v956_v28 = vld [vmem:[#allocation11 + $0xe00] sm:$0xff] }
 0x248   :  { %v2055_v38 = vpack.c.bf16 %v903_v32, %v895_v31  ;;  %v959_v23 = vld [vmem:[#allocation11 + $0xe18] sm:$0xff]  ;;  %v964_v29 = vld [vmem:[#allocation11 + $0xe40] sm:$0xff]  ;;  %v958_v32 = vld [vmem:[#allocation11 + $0xe10] sm:$0xff] }
 0x24a   :  { %1910 = vmatpush1.bf16.msra.mxu1 %v1909_v40  ;;  %2038 = vmatpush1.bf16.msra.mxu0 %v2037_v41  ;;  %v902_v40 = vld [vmem:[#allocation11 + $0xc50] sm:$0xff]  ;;  %v909_v41 = vld [vmem:[#allocation11 + $0xc88] sm:$0xff] }
 0x24b   :  { %1912 = vmatprep.subr.bf16.mxu1 %v1911_v46  ;;  %2040 = vmatprep.subr.bf16.mxu0 %v2039_v47  ;;  %v919_v46 = vld [vmem:[#allocation11 + $0xcd8] sm:$0xff]  ;;  %v1929_v47 = vpack.c.bf16 %v900_v36, %v892_v35  ;;  %v2057_v49 = vpack.c.bf16 %v902_v40, %v894_v39  ;;  %v1931_v52 = vpack.c.bf16 %v917_v44, %v909_v41  ;;  %v981_v35 = vld [vmem:[#allocation11 + $0xec8] sm:$0xff]  ;;  %v972_v40 = vld [vmem:[#allocation11 + $0xe80] sm:$0xff] }
 0x24c   :  { %v2059_v53 = vpack.c.bf16 %v919_v46, %v911_v45  ;;  %v975_v36 = vld [vmem:[#allocation11 + $0xe98] sm:$0xff]  ;;  %v980_v41 = vld [vmem:[#allocation11 + $0xec0] sm:$0xff]  ;;  %v974_v46 = vld [vmem:[#allocation11 + $0xe90] sm:$0xff] }
 0x24e   :  { %1914 = vmatpush1.bf16.msra.mxu1 %v1913_v55  ;;  %2042 = vmatpush1.bf16.msra.mxu0 %v2041_v56  ;;  %v918_v55 = vld [vmem:[#allocation11 + $0xcd0] sm:$0xff]  ;;  %v925_v56 = vld [vmem:[#allocation11 + $0xd08] sm:$0xff] }
 0x24f   :  { %1916 = vmatprep.subr.bf16.mxu1 %v1915_v59  ;;  %2044 = vmatprep.subr.bf16.mxu0 %v2043_v60  ;;  %v935_v59 = vld [vmem:[#allocation11 + $0xd58] sm:$0xff]  ;;  %v1933_v60 = vpack.c.bf16 %v916_v51, %v908_v50  ;;  %v2061_v61 = vpack.c.bf16 %v918_v55, %v910_v54  ;;  %v1935_v1 = vpack.c.bf16 %v933_v57, %v925_v56  ;;  %v997_v50 = vld [vmem:[#allocation11 + $0xf48] sm:$0xff]  ;;  %v988_v55 = vld [vmem:[#allocation11 + $0xf00] sm:$0xff]  ;;  %v352_v57 = vsub.s32 2, %v2701_v21 }
 0x250   :  { %v2063_v2 = vpack.c.bf16 %v935_v59, %v927_v58  ;;  %v991_v51 = vld [vmem:[#allocation11 + $0xf18] sm:$0xff]  ;;  %v996_v56 = vld [vmem:[#allocation11 + $0xf40] sm:$0xff] }
 0x252   :  { %1918 = vmatpush1.bf16.msra.mxu1 %v1917_v5  ;;  %2046 = vmatpush1.bf16.msra.mxu0 %v2045_v6  ;;  %v934_v5 = vld [vmem:[#allocation11 + $0xd50] sm:$0xff]  ;;  %v941_v6 = vld [vmem:[#allocation11 + $0xd88] sm:$0xff] }
 0x253   :  { %1920 = vmatprep.subr.bf16.mxu1 %v1919_v9  ;;  %2048 = vmatprep.subr.bf16.mxu0 %v2047_v10  ;;  %v951_v9 = vld [vmem:[#allocation11 + $0xdd8] sm:$0xff]  ;;  %v1937_v10 = vpack.c.bf16 %v932_v0, %v924_v63  ;;  %v2065_v11 = vpack.c.bf16 %v934_v5, %v926_v4  ;;  %v1939_v15 = vpack.c.bf16 %v949_v7, %v941_v6  ;;  %v1005_v63 = vld [vmem:[#allocation11 + $0xf88] sm:$0xff]  ;;  %v1004_v6 = vld [vmem:[#allocation11 + $0xf80] sm:$0xff] }
 0x254   :  { %v2067_v16 = vpack.c.bf16 %v951_v9, %v943_v8  ;;  %v1013_v0 = vld [vmem:[#allocation11 + $0xfc8] sm:$0xff]  ;;  %v1953_v4 = vpack.c.bf16 %v996_v56, %v988_v55  ;;  %v1012_v7 = vld [vmem:[#allocation11 + $0xfc0] sm:$0xff]  ;;  %v353_v8 = vrot.slane %v2711_v42, %v352_v57  ;;  %v554_v55 = vld [vmem:[#allocation11 + $0x170] sm:$0xff] }
 0x255   :  { %v1955_v9 = vpack.c.bf16 %v1013_v0, %v1005_v63  ;;  %v561_v56 = vld [vmem:[#allocation11 + $0x1a8] sm:$0xff] }
 0x256   :  { %1922 = vmatpush1.bf16.msra.mxu1 %v1921_v18  ;;  %2050 = vmatpush1.bf16.msra.mxu0 %v2049_v19  ;;  %v950_v18 = vld [vmem:[#allocation11 + $0xdd0] sm:$0xff]  ;;  %v957_v19 = vld [vmem:[#allocation11 + $0xe08] sm:$0xff] }
 0x257   :  { %1924 = vmatprep.subr.bf16.mxu1 %v1923_v25  ;;  %2052 = vmatprep.subr.bf16.mxu0 %v2051_v26  ;;  %v967_v25 = vld [vmem:[#allocation11 + $0xe58] sm:$0xff]  ;;  %v1941_v26 = vpack.c.bf16 %v948_v14, %v940_v13  ;;  %v2069_v27 = vpack.c.bf16 %v950_v18, %v942_v17  ;;  %v1943_v30 = vpack.c.bf16 %v965_v20, %v957_v19  ;;  %v1014_v13 = vld [vmem:[#allocation11 + $0xfd0] sm:$0xff]  ;;  %v513_v14 = vld [vmem:[#allocation11 + $0x28] sm:$0xff] }
 0x258   :  { %v2071_v31 = vpack.c.bf16 %v967_v25, %v959_v23  ;;  %v523_v17 = vld [vmem:[#allocation11 + $0x78] sm:$0xff]  ;;  %v1957_v18 = vpack.c.bf16 %v1012_v7, %v1004_v6  ;;  %v500_v20 = vadd.f32 %v2721_v48, %v353_v8  ;;  %v512_v25 = vld [vmem:[#allocation11 + $0x20] sm:$0xff]  ;;  %v577_v6 = vld [vmem:[#allocation11 + $0x228] sm:$0xff] }
 0x259   :  { %v585_v7 = vld [vmem:[#allocation11 + $0x268] sm:$0xff]  ;;  %v579_v8 = vld [vmem:[#allocation11 + $0x238] sm:$0xff] }
 0x25a   :  { %1926 = vmatpush1.bf16.msra.mxu1 %v1925_v33  ;;  %2054 = vmatpush1.bf16.msra.mxu0 %v2053_v34  ;;  %v966_v33 = vld [vmem:[#allocation11 + $0xe50] sm:$0xff]  ;;  %v973_v34 = vld [vmem:[#allocation11 + $0xe88] sm:$0xff] }
 0x25b   :  { %1928 = vmatprep.subr.bf16.mxu1 %v1927_v37  ;;  %2056 = vmatprep.subr.bf16.mxu0 %v2055_v38  ;;  %v983_v37 = vld [vmem:[#allocation11 + $0xed8] sm:$0xff]  ;;  %v1945_v38 = vpack.c.bf16 %v964_v29, %v956_v28  ;;  %v2073_v39 = vpack.c.bf16 %v966_v33, %v958_v32  ;;  %v1947_v44 = vpack.c.bf16 %v981_v35, %v973_v34  ;;  %v522_v28 = vld [vmem:[#allocation11 + $0x70] sm:$0xff]  ;;  %v529_v29 = vld [vmem:[#allocation11 + $0xa8] sm:$0xff]  ;;  %v2740_v34 = vmax.f32 %v500_v20, 0.0 }
 0x25c   :  { %v2075_v45 = vpack.c.bf16 %v983_v37, %v975_v36  ;;  %v539_v32 = vld [vmem:[#allocation11 + $0xf8] sm:$0xff]  ;;  %v528_v35 = vld [vmem:[#allocation11 + $0xa0] sm:$0xff]  ;;  %v530_v37 = vld [vmem:[#allocation11 + $0xb0] sm:$0xff] }
 0x25d   :  { %v536_v36 = vld [vmem:[#allocation11 + $0xe0] sm:$0xff]  ;;  %v601_v20 = vld [vmem:[#allocation11 + $0x2e8] sm:$0xff] }
 0x25e   :  { %1930 = vmatpush1.bf16.msra.mxu1 %v1929_v47  ;;  %2058 = vmatpush1.bf16.msra.mxu0 %v2057_v49  ;;  %v982_v47 = vld [vmem:[#allocation11 + $0xed0] sm:$0xff]  ;;  %v989_v49 = vld [vmem:[#allocation11 + $0xf08] sm:$0xff] }
 0x25f   :  { %1932 = vmatprep.subr.bf16.mxu1 %v1931_v52  ;;  %2060 = vmatprep.subr.bf16.mxu0 %v2059_v53  ;;  %v999_v52 = vld [vmem:[#allocation11 + $0xf58] sm:$0xff]  ;;  %v1949_v53 = vpack.c.bf16 %v980_v41, %v972_v40  ;;  %v2077_v54 = vpack.c.bf16 %v982_v47, %v974_v46  ;;  %v1951_v58 = vpack.c.bf16 %v997_v50, %v989_v49  ;;  %v538_v40 = vld [vmem:[#allocation11 + $0xf0] sm:$0xff]  ;;  %v545_v41 = vld [vmem:[#allocation11 + $0x128] sm:$0xff] }
 0x260   :  { %v2079_v59 = vpack.c.bf16 %v999_v52, %v991_v51  ;;  %v555_v46 = vld [vmem:[#allocation11 + $0x178] sm:$0xff]  ;;  %v2093_v47 = vpack.c.bf16 %v536_v36, %v528_v35  ;;  %v2221_v49 = vpack.c.bf16 %v538_v40, %v530_v37  ;;  %v544_v51 = vld [vmem:[#allocation11 + $0x120] sm:$0xff] }
 0x261   :  { %v552_v52 = vld [vmem:[#allocation11 + $0x160] sm:$0xff]  ;;  %v611_v35 = vld [vmem:[#allocation11 + $0x338] sm:$0xff] }
 0x262   :  { %1934 = vmatpush1.bf16.msra.mxu1 %v1933_v60  ;;  %2062 = vmatpush1.bf16.msra.mxu0 %v2061_v61  ;;  %v990_v60 = vld [vmem:[#allocation11 + $0xf10] sm:$0xff]  ;;  %v619_v36 = vld [vmem:[#allocation11 + $0x378] sm:$0xff]  ;;  %v608_v40 = vld [vmem:[#allocation11 + $0x320] sm:$0xff] }
 0x263   :  { %1936 = vmatprep.subr.bf16.mxu1 %v1935_v1  ;;  %2064 = vmatprep.subr.bf16.mxu0 %v2063_v2  ;;  %v998_v61 = vld [vmem:[#allocation11 + $0xf50] sm:$0xff]  ;;  %v1007_v1 = vld [vmem:[#allocation11 + $0xf98] sm:$0xff] }
 0x264   :  { %v1015_v2 = vld [vmem:[#allocation11 + $0xfd8] sm:$0xff]  ;;  %v2081_v5 = vpack.c.bf16 %v998_v61, %v990_v60  ;;  %v2097_v61 = vpack.c.bf16 %v552_v52, %v544_v51 }
 0x265   :  { %v571_v60 = vld [vmem:[#allocation11 + $0x1f8] sm:$0xff] }
 0x266   :  { %1938 = vmatpush1.bf16.msra.mxu1 %v1937_v10  ;;  %2066 = vmatpush1.bf16.msra.mxu0 %v2065_v11  ;;  %v2083_v10 = vpack.c.bf16 %v1015_v2, %v1007_v1  ;;  %v1006_v11 = vld [vmem:[#allocation11 + $0xf90] sm:$0xff]  ;;  %v568_v1 = vld [vmem:[#allocation11 + $0x1e0] sm:$0xff]  ;;  %v635_v51 = vld [vmem:[#allocation11 + $0x3f8] sm:$0xff] }
 0x267   :  { %1940 = vmatprep.subr.bf16.mxu1 %v1939_v15  ;;  %2068 = vmatprep.subr.bf16.mxu0 %v2067_v16  ;;  %v521_v15 = vld [vmem:[#allocation11 + $0x68] sm:$0xff]  ;;  %v515_v16 = vld [vmem:[#allocation11 + $0x38] sm:$0xff]  ;;  %v2085_v19 = vpack.c.bf16 %v1014_v13, %v1006_v11  ;;  %v562_v2 = vld [vmem:[#allocation11 + $0x1b0] sm:$0xff]  ;;  %v2103_v13 = vpack.c.bf16 %v585_v7, %v577_v6 }
 0x268   :  { %v2087_v23 = vpack.c.bf16 %v521_v15, %v513_v14  ;;  %v2215_v42 = vpack.c.bf16 %v523_v17, %v515_v16  ;;  %v576_v14 = vld [vmem:[#allocation11 + $0x220] sm:$0xff]  ;;  %v578_v16 = vld [vmem:[#allocation11 + $0x230] sm:$0xff] }
 0x269   :  { %v584_v15 = vld [vmem:[#allocation11 + $0x260] sm:$0xff]  ;;  %v642_v7 = vld [vmem:[#allocation11 + $0x430] sm:$0xff] }
 0x26a   :  { %1942 = vmatpush1.bf16.msra.mxu1 %v1941_v26  ;;  %2070 = vmatpush1.bf16.msra.mxu0 %v2069_v27  ;;  %v520_v26 = vld [vmem:[#allocation11 + $0x60] sm:$0xff]  ;;  %v514_v27 = vld [vmem:[#allocation11 + $0x30] sm:$0xff] }
 0x26b   :  { %1944 = vmatprep.subr.bf16.mxu1 %v1943_v30  ;;  %2072 = vmatprep.subr.bf16.mxu0 %v2071_v31  ;;  %v537_v30 = vld [vmem:[#allocation11 + $0xe8] sm:$0xff]  ;;  %v531_v31 = vld [vmem:[#allocation11 + $0xb8] sm:$0xff]  ;;  %v2089_v33 = vpack.c.bf16 %v520_v26, %v512_v25  ;;  %v2217_v48 = vpack.c.bf16 %v522_v28, %v514_v27  ;;  %v2105_v25 = vpack.c.bf16 %v584_v15, %v576_v14  ;;  %v592_v28 = vld [vmem:[#allocation11 + $0x2a0] sm:$0xff] }
 0x26c   :  { %v648_v6 = vld [vmem:[#allocation11 + $0x460] sm:$0xff]  ;;  %v667_v14 = vld [vmem:[#allocation11 + $0x4f8] sm:$0xff] }
 0x26e   :  { %1946 = vmatpush1.bf16.msra.mxu1 %v1945_v38  ;;  %2074 = vmatpush1.bf16.msra.mxu0 %v2073_v39  ;;  %v2091_v38 = vpack.c.bf16 %v537_v30, %v529_v29  ;;  %v2219_v39 = vpack.c.bf16 %v539_v32, %v531_v31  ;;  %v600_v29 = vld [vmem:[#allocation11 + $0x2e0] sm:$0xff]  ;;  %v594_v30 = vld [vmem:[#allocation11 + $0x2b0] sm:$0xff] }
 0x26f   :  { %1948 = vmatprep.subr.bf16.mxu1 %v1947_v44  ;;  %2076 = vmatprep.subr.bf16.mxu0 %v2075_v45  ;;  %v553_v44 = vld [vmem:[#allocation11 + $0x168] sm:$0xff]  ;;  %v547_v45 = vld [vmem:[#allocation11 + $0x138] sm:$0xff]  ;;  %v602_v32 = vld [vmem:[#allocation11 + $0x2f0] sm:$0xff]  ;;  %v2109_v37 = vpack.c.bf16 %v600_v29, %v592_v28 }
 0x270   :  { %v2095_v50 = vpack.c.bf16 %v553_v44, %v545_v41  ;;  %v616_v41 = vld [vmem:[#allocation11 + $0x360] sm:$0xff]  ;;  %v610_v44 = vld [vmem:[#allocation11 + $0x330] sm:$0xff]  ;;  %v683_v28 = vld [vmem:[#allocation11 + $0x578] sm:$0xff] }
 0x271   :  { %v2113_v52 = vpack.c.bf16 %v616_v41, %v608_v40  ;;  %v699_v40 = vld [vmem:[#allocation11 + $0x5f8] sm:$0xff] }
 0x272   :  { %1950 = vmatpush1.bf16.msra.mxu1 %v1949_v53  ;;  %2078 = vmatpush1.bf16.msra.mxu0 %v2077_v54  ;;  %v546_v53 = vld [vmem:[#allocation11 + $0x130] sm:$0xff]  ;;  %v2223_v54 = vpack.c.bf16 %v555_v46, %v547_v45  ;;  %v2239_v45 = vpack.c.bf16 %v619_v36, %v611_v35 }
 0x273   :  { %1952 = vmatprep.subr.bf16.mxu1 %v1951_v58  ;;  %2080 = vmatprep.subr.bf16.mxu0 %v2079_v59  ;;  %v569_v58 = vld [vmem:[#allocation11 + $0x1e8] sm:$0xff]  ;;  %v563_v59 = vld [vmem:[#allocation11 + $0x1b8] sm:$0xff]  ;;  %v2225_v63 = vpack.c.bf16 %v554_v55, %v546_v53  ;;  %v618_v46 = vld [vmem:[#allocation11 + $0x370] sm:$0xff] }
 0x274   :  { %v2099_v0 = vpack.c.bf16 %v569_v58, %v561_v56  ;;  %v2241_v53 = vpack.c.bf16 %v618_v46, %v610_v44  ;;  %v624_v55 = vld [vmem:[#allocation11 + $0x3a0] sm:$0xff]  ;;  %v626_v58 = vld [vmem:[#allocation11 + $0x3b0] sm:$0xff] }
 0x275   :  { %v632_v56 = vld [vmem:[#allocation11 + $0x3e0] sm:$0xff]  ;;  %v682_v36 = vld [vmem:[#allocation11 + $0x570] sm:$0xff] }
 0x276   :  { %1954 = vmatpush1.bf16.msra.mxu1 %v1953_v4  ;;  %2082 = vmatpush1.bf16.msra.mxu0 %v2081_v5  ;;  %v2227_v4 = vpack.c.bf16 %v571_v60, %v563_v59  ;;  %v570_v5 = vld [vmem:[#allocation11 + $0x1f0] sm:$0xff]  ;;  %v688_v46 = vld [vmem:[#allocation11 + $0x5a0] sm:$0xff] }
 0x277   :  { %1956 = vmatprep.subr.bf16.mxu1 %v1955_v9  ;;  %2084 = vmatprep.subr.bf16.mxu0 %v2083_v10  ;;  %v587_v9 = vld [vmem:[#allocation11 + $0x278] sm:$0xff]  ;;  %v2229_v11 = vpack.c.bf16 %v570_v5, %v562_v2  ;;  %v634_v60 = vld [vmem:[#allocation11 + $0x3f0] sm:$0xff]  ;;  %v640_v5 = vld [vmem:[#allocation11 + $0x420] sm:$0xff] }
 0x278   :  { %v2231_v17 = vpack.c.bf16 %v587_v9, %v579_v8  ;;  %v2245_v2 = vpack.c.bf16 %v634_v60, %v626_v58  ;;  %v650_v9 = vld [vmem:[#allocation11 + $0x470] sm:$0xff]  ;;  %v2121_v15 = vpack.c.bf16 %v648_v6, %v640_v5  ;;  %v704_v60 = vld [vmem:[#allocation11 + $0x620] sm:$0xff]  ;;  %v731_v5 = vld [vmem:[#allocation11 + $0x6f8] sm:$0xff] }
 0x27a   :  { %1958 = vmatpush1.bf16.msra.mxu1 %v1957_v18  ;;  %2086 = vmatpush1.bf16.msra.mxu0 %v2085_v19  ;;  %v586_v18 = vld [vmem:[#allocation11 + $0x270] sm:$0xff]  ;;  %v593_v19 = vld [vmem:[#allocation11 + $0x2a8] sm:$0xff] }
 0x27b   :  { %2088 = vmatprep.subr.bf16.mxu1 %v2087_v23  ;;  %2216 = vmatprep.subr.bf16.mxu0 %v2215_v42  ;;  %v595_v23 = vld [vmem:[#allocation11 + $0x2b8] sm:$0xff]  ;;  %v2233_v26 = vpack.c.bf16 %v586_v18, %v578_v16  ;;  %v2107_v27 = vpack.c.bf16 %v601_v20, %v593_v19  ;;  %v2249_v16 = vpack.c.bf16 %v650_v9, %v642_v7  ;;  %v656_v18 = vld [vmem:[#allocation11 + $0x4a0] sm:$0xff]  ;;  %v658_v20 = vld [vmem:[#allocation11 + $0x4b0] sm:$0xff] }
 0x27c   :  { %v603_v42 = vld [vmem:[#allocation11 + $0x2f8] sm:$0xff]  ;;  %v664_v19 = vld [vmem:[#allocation11 + $0x4e0] sm:$0xff] }
 0x27d   :  { %1198 = vmatmul.mubr.f32.vlgmr.msra.gmra.mrb[2].mxu1 %v2740_v34  ;;  %1340 = vmatmul.mubr.f32.vlgmr.msra.gmra.mrb[4].mxu0 %v2740_v34  ;;  %v2235_v31 = vpack.c.bf16 %v603_v42, %v595_v23  ;;  %v666_v42 = vld [vmem:[#allocation11 + $0x4f0] sm:$0xff]  ;;  %v2125_v29 = vpack.c.bf16 %v664_v19, %v656_v18  ;;  %v720_v9 = vld [vmem:[#allocation11 + $0x6a0] sm:$0xff]  ;;  %v747_v18 = vld [vmem:[#allocation11 + $0x778] sm:$0xff] }
 0x27e   :  { %2090 = vmatpush1.bf16.msra.mxu1 %v2089_v33  ;;  %1410 = vmatprep.mubr.f32.mxu1 %v2723_v62  ;;  %v609_v33 = vld [vmem:[#allocation11 + $0x328] sm:$0xff] }
 0x27f   :  { %2218 = vmatpush1.bf16.msra.mxu0 %v2217_v48  ;;  %1552 = vmatprep.mubr.f32.mxu0 %v2723_v62  ;;  %v560_v62 = vld [vmem:[#allocation11 + $0x1a0] sm:$0xff]  ;;  %v617_v48 = vld [vmem:[#allocation11 + $0x368] sm:$0xff] }
 0x280   :  { %2092 = vmatprep.subr.bf16.mxu1 %v2091_v38  ;;  %2220 = vmatprep.subr.bf16.mxu0 %v2219_v39  ;;  %v2101_v10 = vpack.c.bf16 %v568_v1, %v560_v62  ;;  %v2237_v38 = vpack.c.bf16 %v602_v32, %v594_v30  ;;  %v2111_v39 = vpack.c.bf16 %v617_v48, %v609_v33  ;;  %v651_v62 = vld [vmem:[#allocation11 + $0x478] sm:$0xff]  ;;  %v672_v32 = vld [vmem:[#allocation11 + $0x520] sm:$0xff]  ;;  %v674_v48 = vld [vmem:[#allocation11 + $0x530] sm:$0xff] }
 0x281   :  { %v2117_v1 = vpack.c.bf16 %v632_v56, %v624_v55  ;;  %v2253_v30 = vpack.c.bf16 %v666_v42, %v658_v20  ;;  %v680_v33 = vld [vmem:[#allocation11 + $0x560] sm:$0xff]  ;;  %v2257_v44 = vpack.c.bf16 %v682_v36, %v674_v48  ;;  %v715_v55 = vld [vmem:[#allocation11 + $0x678] sm:$0xff] }
 0x282   :  { %2094 = vmatpush1.bf16.msra.mxu1 %v2093_v47  ;;  %v625_v47 = vld [vmem:[#allocation11 + $0x3a8] sm:$0xff]  ;;  %v2129_v41 = vpack.c.bf16 %v680_v33, %v672_v32  ;;  %v736_v42 = vld [vmem:[#allocation11 + $0x720] sm:$0xff]  ;;  %v763_v32 = vld [vmem:[#allocation11 + $0x7f8] sm:$0xff] }
 0x283   :  { %2222 = vmatpush1.bf16.msra.mxu0 %v2221_v49  ;;  %2096 = vmatprep.subr.bf16.mxu1 %v2095_v50  ;;  %v633_v49 = vld [vmem:[#allocation11 + $0x3e8] sm:$0xff]  ;;  %v627_v50 = vld [vmem:[#allocation11 + $0x3b8] sm:$0xff]  ;;  %v752_v36 = vld [vmem:[#allocation11 + $0x7a0] sm:$0xff] }
 0x284   :  { %2224 = vmatprep.subr.bf16.mxu0 %v2223_v54  ;;  %v2115_v54 = vpack.c.bf16 %v633_v49, %v625_v47  ;;  %v2243_v59 = vpack.c.bf16 %v635_v51, %v627_v50  ;;  %v696_v47 = vld [vmem:[#allocation11 + $0x5e0] sm:$0xff]  ;;  %v690_v49 = vld [vmem:[#allocation11 + $0x5b0] sm:$0xff] }
 0x285   :  { %v698_v51 = vld [vmem:[#allocation11 + $0x5f0] sm:$0xff]  ;;  %v2133_v56 = vpack.c.bf16 %v696_v47, %v688_v46  ;;  %v779_v46 = vld [vmem:[#allocation11 + $0x878] sm:$0xff] }
 0x286   :  { %2098 = vmatpush1.bf16.msra.mxu1 %v2097_v61  ;;  %v641_v61 = vld [vmem:[#allocation11 + $0x428] sm:$0xff]  ;;  %v2261_v58 = vpack.c.bf16 %v698_v51, %v690_v49  ;;  %v768_v51 = vld [vmem:[#allocation11 + $0x820] sm:$0xff] }
 0x287   :  { %2226 = vmatpush1.bf16.msra.mxu0 %v2225_v63  ;;  %2100 = vmatprep.subr.bf16.mxu1 %v2099_v0  ;;  %v649_v63 = vld [vmem:[#allocation11 + $0x468] sm:$0xff]  ;;  %v643_v0 = vld [vmem:[#allocation11 + $0x438] sm:$0xff] }
 0x288   :  { %2228 = vmatprep.subr.bf16.mxu0 %v2227_v4  ;;  %v2119_v4 = vpack.c.bf16 %v649_v63, %v641_v61  ;;  %v2247_v8 = vpack.c.bf16 %v651_v62, %v643_v0  ;;  %v712_v61 = vld [vmem:[#allocation11 + $0x660] sm:$0xff]  ;;  %v706_v63 = vld [vmem:[#allocation11 + $0x630] sm:$0xff] }
 0x289   :  { %v714_v62 = vld [vmem:[#allocation11 + $0x670] sm:$0xff]  ;;  %v2137_v6 = vpack.c.bf16 %v712_v61, %v704_v60  ;;  %v787_v60 = vld [vmem:[#allocation11 + $0x8b8] sm:$0xff] }
 0x28a   :  { %2102 = vmatpush1.bf16.msra.mxu1 %v2101_v10  ;;  %v657_v10 = vld [vmem:[#allocation11 + $0x4a8] sm:$0xff]  ;;  %v2265_v7 = vpack.c.bf16 %v714_v62, %v706_v63  ;;  %v795_v61 = vld [vmem:[#allocation11 + $0x8f8] sm:$0xff]  ;;  %v792_v62 = vld [vmem:[#allocation11 + $0x8e0] sm:$0xff] }
 0x28b   :  { %2230 = vmatpush1.bf16.msra.mxu0 %v2229_v11  ;;  %2104 = vmatprep.subr.bf16.mxu1 %v2103_v13  ;;  %v665_v11 = vld [vmem:[#allocation11 + $0x4e8] sm:$0xff]  ;;  %v659_v13 = vld [vmem:[#allocation11 + $0x4b8] sm:$0xff] }
 0x28c   :  { %2232 = vmatprep.subr.bf16.mxu0 %v2231_v17  ;;  %v2123_v17 = vpack.c.bf16 %v665_v11, %v657_v10  ;;  %v2251_v23 = vpack.c.bf16 %v667_v14, %v659_v13  ;;  %v728_v10 = vld [vmem:[#allocation11 + $0x6e0] sm:$0xff]  ;;  %v722_v11 = vld [vmem:[#allocation11 + $0x6b0] sm:$0xff] }
 0x28d   :  { %v730_v14 = vld [vmem:[#allocation11 + $0x6f0] sm:$0xff]  ;;  %v2141_v19 = vpack.c.bf16 %v728_v10, %v720_v9  ;;  %v811_v9 = vld [vmem:[#allocation11 + $0x978] sm:$0xff] }
 0x28e   :  { %2106 = vmatpush1.bf16.msra.mxu1 %v2105_v25  ;;  %v673_v25 = vld [vmem:[#allocation11 + $0x528] sm:$0xff]  ;;  %v2269_v20 = vpack.c.bf16 %v730_v14, %v722_v11  ;;  %v800_v14 = vld [vmem:[#allocation11 + $0x920] sm:$0xff] }
 0x28f   :  { %2234 = vmatpush1.bf16.msra.mxu0 %v2233_v26  ;;  %2108 = vmatprep.subr.bf16.mxu1 %v2107_v27  ;;  %v681_v26 = vld [vmem:[#allocation11 + $0x568] sm:$0xff]  ;;  %v675_v27 = vld [vmem:[#allocation11 + $0x538] sm:$0xff] }
 0x290   :  { %2236 = vmatprep.subr.bf16.mxu0 %v2235_v31  ;;  %v2127_v31 = vpack.c.bf16 %v681_v26, %v673_v25  ;;  %v2255_v35 = vpack.c.bf16 %v683_v28, %v675_v27  ;;  %v744_v25 = vld [vmem:[#allocation11 + $0x760] sm:$0xff]  ;;  %v738_v26 = vld [vmem:[#allocation11 + $0x730] sm:$0xff] }
 0x291   :  { %v746_v28 = vld [vmem:[#allocation11 + $0x770] sm:$0xff]  ;;  %v2145_v33 = vpack.c.bf16 %v744_v25, %v736_v42 }
 0x292   :  { %2110 = vmatpush1.bf16.msra.mxu1 %v2109_v37  ;;  %v689_v37 = vld [vmem:[#allocation11 + $0x5a8] sm:$0xff]  ;;  %v2273_v48 = vpack.c.bf16 %v746_v28, %v738_v26  ;;  %v824_v28 = vld [vmem:[#allocation11 + $0x9e0] sm:$0xff] }
 0x293   :  { %2238 = vmatpush1.bf16.msra.mxu0 %v2237_v38  ;;  %2112 = vmatprep.subr.bf16.mxu1 %v2111_v39  ;;  %v697_v38 = vld [vmem:[#allocation11 + $0x5e8] sm:$0xff]  ;;  %v691_v39 = vld [vmem:[#allocation11 + $0x5b8] sm:$0xff] }
 0x294   :  { %2240 = vmatprep.subr.bf16.mxu0 %v2239_v45  ;;  %v2131_v45 = vpack.c.bf16 %v697_v38, %v689_v37  ;;  %v2259_v50 = vpack.c.bf16 %v699_v40, %v691_v39  ;;  %v760_v37 = vld [vmem:[#allocation11 + $0x7e0] sm:$0xff]  ;;  %v754_v38 = vld [vmem:[#allocation11 + $0x7b0] sm:$0xff] }
 0x295   :  { %v762_v40 = vld [vmem:[#allocation11 + $0x7f0] sm:$0xff]  ;;  %v2149_v47 = vpack.c.bf16 %v760_v37, %v752_v36 }
 0x296   :  { %2114 = vmatpush1.bf16.msra.mxu1 %v2113_v52  ;;  %v705_v52 = vld [vmem:[#allocation11 + $0x628] sm:$0xff]  ;;  %v2277_v49 = vpack.c.bf16 %v762_v40, %v754_v38  ;;  %v832_v38 = vld [vmem:[#allocation11 + $0xa20] sm:$0xff]  ;;  %v834_v40 = vld [vmem:[#allocation11 + $0xa30] sm:$0xff] }
 0x297   :  { %2242 = vmatpush1.bf16.msra.mxu0 %v2241_v53  ;;  %2116 = vmatprep.subr.bf16.mxu1 %v2115_v54  ;;  %v713_v53 = vld [vmem:[#allocation11 + $0x668] sm:$0xff]  ;;  %v707_v54 = vld [vmem:[#allocation11 + $0x638] sm:$0xff] }
 0x298   :  { %2244 = vmatprep.subr.bf16.mxu0 %v2243_v59  ;;  %v2135_v59 = vpack.c.bf16 %v713_v53, %v705_v52  ;;  %v2263_v0 = vpack.c.bf16 %v715_v55, %v707_v54  ;;  %v776_v52 = vld [vmem:[#allocation11 + $0x860] sm:$0xff]  ;;  %v770_v54 = vld [vmem:[#allocation11 + $0x830] sm:$0xff] }
 0x299   :  { %v778_v55 = vld [vmem:[#allocation11 + $0x870] sm:$0xff] }
 0x29a   :  { %2118 = vmatpush1.bf16.msra.mxu1 %v2117_v1  ;;  %v721_v1 = vld [vmem:[#allocation11 + $0x6a8] sm:$0xff]  ;;  %v2281_v63 = vpack.c.bf16 %v778_v55, %v770_v54  ;;  %v856_v54 = vld [vmem:[#allocation11 + $0xae0] sm:$0xff]  ;;  %v850_v55 = vld [vmem:[#allocation11 + $0xab0] sm:$0xff] }
 0x29b   :  { %2246 = vmatpush1.bf16.msra.mxu0 %v2245_v2  ;;  %2120 = vmatprep.subr.bf16.mxu1 %v2119_v4  ;;  %v729_v2 = vld [vmem:[#allocation11 + $0x6e8] sm:$0xff]  ;;  %v723_v4 = vld [vmem:[#allocation11 + $0x6b8] sm:$0xff] }
 0x29c   :  { %2248 = vmatprep.subr.bf16.mxu0 %v2247_v8  ;;  %v2139_v8 = vpack.c.bf16 %v729_v2, %v721_v1  ;;  %v2267_v13 = vpack.c.bf16 %v731_v5, %v723_v4  ;;  %v786_v1 = vld [vmem:[#allocation11 + $0x8b0] sm:$0xff]  ;;  %v801_v5 = vld [vmem:[#allocation11 + $0x928] sm:$0xff] }
 0x29d   :  { %v794_v4 = vld [vmem:[#allocation11 + $0x8f0] sm:$0xff] }
 0x29e   :  { %2122 = vmatpush1.bf16.msra.mxu1 %v2121_v15  ;;  %v737_v15 = vld [vmem:[#allocation11 + $0x728] sm:$0xff]  ;;  %v2285_v11 = vpack.c.bf16 %v794_v4, %v786_v1  ;;  %v872_v4 = vld [vmem:[#allocation11 + $0xb60] sm:$0xff] }
 0x29f   :  { %2250 = vmatpush1.bf16.msra.mxu0 %v2249_v16  ;;  %2124 = vmatprep.subr.bf16.mxu1 %v2123_v17  ;;  %v745_v16 = vld [vmem:[#allocation11 + $0x768] sm:$0xff]  ;;  %v739_v17 = vld [vmem:[#allocation11 + $0x738] sm:$0xff] }
 0x2a0   :  { %2252 = vmatprep.subr.bf16.mxu0 %v2251_v23  ;;  %v2143_v23 = vpack.c.bf16 %v745_v16, %v737_v15  ;;  %v2271_v27 = vpack.c.bf16 %v747_v18, %v739_v17  ;;  %v808_v15 = vld [vmem:[#allocation11 + $0x960] sm:$0xff]  ;;  %v802_v16 = vld [vmem:[#allocation11 + $0x930] sm:$0xff] }
 0x2a1   :  { %v810_v18 = vld [vmem:[#allocation11 + $0x970] sm:$0xff]  ;;  %v2161_v42 = vpack.c.bf16 %v808_v15, %v800_v14 }
 0x2a2   :  { %2126 = vmatpush1.bf16.msra.mxu1 %v2125_v29  ;;  %v753_v29 = vld [vmem:[#allocation11 + $0x7a8] sm:$0xff]  ;;  %v2289_v25 = vpack.c.bf16 %v810_v18, %v802_v16  ;;  %v880_v16 = vld [vmem:[#allocation11 + $0xba0] sm:$0xff]  ;;  %v882_v18 = vld [vmem:[#allocation11 + $0xbb0] sm:$0xff] }
 0x2a3   :  { %2254 = vmatpush1.bf16.msra.mxu0 %v2253_v30  ;;  %2128 = vmatprep.subr.bf16.mxu1 %v2127_v31  ;;  %v761_v30 = vld [vmem:[#allocation11 + $0x7e8] sm:$0xff]  ;;  %v755_v31 = vld [vmem:[#allocation11 + $0x7b8] sm:$0xff] }
 0x2a4   :  { %2256 = vmatprep.subr.bf16.mxu0 %v2255_v35  ;;  %v2147_v35 = vpack.c.bf16 %v761_v30, %v753_v29  ;;  %v2275_v39 = vpack.c.bf16 %v763_v32, %v755_v31  ;;  %v818_v29 = vld [vmem:[#allocation11 + $0x9b0] sm:$0xff]  ;;  %v833_v31 = vld [vmem:[#allocation11 + $0xa28] sm:$0xff] }
 0x2a5   :  { %v841_v32 = vld [vmem:[#allocation11 + $0xa68] sm:$0xff] }
 0x2a6   :  { %2130 = vmatpush1.bf16.msra.mxu1 %v2129_v41  ;;  %v769_v41 = vld [vmem:[#allocation11 + $0x828] sm:$0xff]  ;;  %v2167_v37 = vpack.c.bf16 %v841_v32, %v833_v31  ;;  %v906_v32 = vld [vmem:[#allocation11 + $0xc70] sm:$0xff] }
 0x2a7   :  { %2258 = vmatpush1.bf16.msra.mxu0 %v2257_v44  ;;  %2132 = vmatprep.subr.bf16.mxu1 %v2131_v45  ;;  %v777_v44 = vld [vmem:[#allocation11 + $0x868] sm:$0xff]  ;;  %v771_v45 = vld [vmem:[#allocation11 + $0x838] sm:$0xff] }
 0x2a8   :  { %2260 = vmatprep.subr.bf16.mxu0 %v2259_v50  ;;  %v2151_v50 = vpack.c.bf16 %v777_v44, %v769_v41  ;;  %v2279_v53 = vpack.c.bf16 %v779_v46, %v771_v45  ;;  %v842_v44 = vld [vmem:[#allocation11 + $0xa70] sm:$0xff]  ;;  %v849_v45 = vld [vmem:[#allocation11 + $0xaa8] sm:$0xff] }
 0x2a9   :  { %v857_v46 = vld [vmem:[#allocation11 + $0xae8] sm:$0xff] }
 0x2aa   :  { %2134 = vmatpush1.bf16.msra.mxu1 %v2133_v56  ;;  %v785_v56 = vld [vmem:[#allocation11 + $0x8a8] sm:$0xff] }
 0x2ab   :  { %2262 = vmatpush1.bf16.msra.mxu0 %v2261_v58  ;;  %2136 = vmatprep.subr.bf16.mxu1 %v2135_v59  ;;  %v793_v58 = vld [vmem:[#allocation11 + $0x8e8] sm:$0xff]  ;;  %v2153_v59 = vpack.c.bf16 %v776_v52, %v768_v51  ;;  %v2297_v51 = vpack.c.bf16 %v842_v44, %v834_v40  ;;  %v2171_v52 = vpack.c.bf16 %v857_v46, %v849_v45  ;;  %v912_v40 = vld [vmem:[#allocation11 + $0xca0] sm:$0xff]  ;;  %v914_v44 = vld [vmem:[#allocation11 + $0xcb0] sm:$0xff] }
 0x2ac   :  { %2264 = vmatprep.subr.bf16.mxu0 %v2263_v0  ;;  %v784_v0 = vld [vmem:[#allocation11 + $0x8a0] sm:$0xff]  ;;  %v2155_v2 = vpack.c.bf16 %v793_v58, %v785_v56  ;;  %v858_v58 = vld [vmem:[#allocation11 + $0xaf0] sm:$0xff] }
 0x2ad   :  { %v2157_v10 = vpack.c.bf16 %v792_v62, %v784_v0  ;;  %v2301_v62 = vpack.c.bf16 %v858_v58, %v850_v55  ;;  %v922_v46 = vld [vmem:[#allocation11 + $0xcf0] sm:$0xff]  ;;  %v928_v55 = vld [vmem:[#allocation11 + $0xd20] sm:$0xff] }
 0x2ae   :  { %2138 = vmatpush1.bf16.msra.mxu1 %v2137_v6  ;;  %v809_v6 = vld [vmem:[#allocation11 + $0x968] sm:$0xff]  ;;  %v930_v58 = vld [vmem:[#allocation11 + $0xd30] sm:$0xff] }
 0x2af   :  { %2266 = vmatpush1.bf16.msra.mxu0 %v2265_v7  ;;  %2140 = vmatprep.subr.bf16.mxu1 %v2139_v8  ;;  %v2283_v7 = vpack.c.bf16 %v795_v61, %v787_v60  ;;  %v803_v8 = vld [vmem:[#allocation11 + $0x938] sm:$0xff]  ;;  %v873_v60 = vld [vmem:[#allocation11 + $0xb68] sm:$0xff] }
 0x2b0   :  { %2268 = vmatprep.subr.bf16.mxu0 %v2267_v13  ;;  %v2159_v13 = vpack.c.bf16 %v809_v6, %v801_v5  ;;  %v2287_v17 = vpack.c.bf16 %v811_v9, %v803_v8  ;;  %v867_v61 = vld [vmem:[#allocation11 + $0xb38] sm:$0xff]  ;;  %v866_v5 = vld [vmem:[#allocation11 + $0xb30] sm:$0xff]  ;;  %v881_v8 = vld [vmem:[#allocation11 + $0xba8] sm:$0xff] }
 0x2b1   :  { %v889_v9 = vld [vmem:[#allocation11 + $0xbe8] sm:$0xff] }
 0x2b2   :  { %2142 = vmatpush1.bf16.msra.mxu1 %v2141_v19  ;;  %v817_v19 = vld [vmem:[#allocation11 + $0x9a8] sm:$0xff]  ;;  %v2179_v15 = vpack.c.bf16 %v889_v9, %v881_v8  ;;  %v954_v9 = vld [vmem:[#allocation11 + $0xdf0] sm:$0xff] }
 0x2b3   :  { %2270 = vmatpush1.bf16.msra.mxu0 %v2269_v20  ;;  %2144 = vmatprep.subr.bf16.mxu1 %v2143_v23  ;;  %v825_v20 = vld [vmem:[#allocation11 + $0x9e8] sm:$0xff]  ;;  %v819_v23 = vld [vmem:[#allocation11 + $0x9b8] sm:$0xff] }
 0x2b4   :  { %2272 = vmatprep.subr.bf16.mxu0 %v2271_v27  ;;  %v2163_v26 = vpack.c.bf16 %v825_v20, %v817_v19  ;;  %v816_v27 = vld [vmem:[#allocation11 + $0x9a0] sm:$0xff]  ;;  %v890_v20 = vld [vmem:[#allocation11 + $0xbf0] sm:$0xff] }
 0x2b6   :  { %2146 = vmatpush1.bf16.msra.mxu1 %v2145_v33  ;;  %v835_v33 = vld [vmem:[#allocation11 + $0xa38] sm:$0xff] }
 0x2b7   :  { %2274 = vmatpush1.bf16.msra.mxu0 %v2273_v48  ;;  %2148 = vmatprep.subr.bf16.mxu1 %v2147_v35  ;;  %v843_v48 = vld [vmem:[#allocation11 + $0xa78] sm:$0xff]  ;;  %v2165_v35 = vpack.c.bf16 %v824_v28, %v816_v27  ;;  %v2309_v27 = vpack.c.bf16 %v890_v20, %v882_v18  ;;  %v960_v18 = vld [vmem:[#allocation11 + $0xe20] sm:$0xff]  ;;  %v962_v20 = vld [vmem:[#allocation11 + $0xe30] sm:$0xff] }
 0x2b8   :  { %2276 = vmatprep.subr.bf16.mxu0 %v2275_v39  ;;  %v840_v39 = vld [vmem:[#allocation11 + $0xa60] sm:$0xff]  ;;  %v2295_v41 = vpack.c.bf16 %v843_v48, %v835_v33  ;;  %v913_v33 = vld [vmem:[#allocation11 + $0xca8] sm:$0xff] }
 0x2b9   :  { %v921_v48 = vld [vmem:[#allocation11 + $0xce8] sm:$0xff] }
 0x2ba   :  { %2150 = vmatpush1.bf16.msra.mxu1 %v2149_v47  ;;  %v851_v47 = vld [vmem:[#allocation11 + $0xab8] sm:$0xff] }
 0x2bb   :  { %2278 = vmatpush1.bf16.msra.mxu0 %v2277_v49  ;;  %2152 = vmatprep.subr.bf16.mxu1 %v2151_v50  ;;  %v859_v49 = vld [vmem:[#allocation11 + $0xaf8] sm:$0xff]  ;;  %v2169_v50 = vpack.c.bf16 %v840_v39, %v832_v38  ;;  %v2187_v39 = vpack.c.bf16 %v921_v48, %v913_v33  ;;  %v986_v48 = vld [vmem:[#allocation11 + $0xef0] sm:$0xff] }
 0x2bc   :  { %2280 = vmatprep.subr.bf16.mxu0 %v2279_v53  ;;  %v848_v53 = vld [vmem:[#allocation11 + $0xaa0] sm:$0xff]  ;;  %v2299_v56 = vpack.c.bf16 %v859_v49, %v851_v47  ;;  %v929_v47 = vld [vmem:[#allocation11 + $0xd28] sm:$0xff] }
 0x2bd   :  { %1411 = vmatmul.mubr.f32.vlgmr.msra.gmra.mrb[4].mxu1 %v2725_v3  ;;  %v2173_v0 = vpack.c.bf16 %v856_v54, %v848_v53  ;;  %v937_v49 = vld [vmem:[#allocation11 + $0xd68] sm:$0xff]  ;;  %v2317_v53 = vpack.c.bf16 %v922_v46, %v914_v44  ;;  %v992_v44 = vld [vmem:[#allocation11 + $0xf20] sm:$0xff]  ;;  %v994_v46 = vld [vmem:[#allocation11 + $0xf30] sm:$0xff] }
 0x2be   :  { %1553 = vmatmul.mubr.f32.vlgmr.msra.gmra.mrb[6].mxu0 %v2725_v3  ;;  %2154 = vmatpush1.bf16.msra.mxu1 %v2153_v59  ;;  %v827_v3 = vld [vmem:[#allocation11 + $0x9f8] sm:$0xff]  ;;  %v865_v59 = vld [vmem:[#allocation11 + $0xb28] sm:$0xff]  ;;  %v2191_v54 = vpack.c.bf16 %v937_v49, %v929_v47  ;;  %v1002_v49 = vld [vmem:[#allocation11 + $0xf70] sm:$0xff] }
 0x2bf   :  { %1481 = vmatprep.mubr.f32.mxu1 %v2729_v12  ;;  %2282 = vmatpush1.bf16.msra.mxu0 %v2281_v63  ;;  %v2291_v30 = vpack.c.bf16 %v827_v3, %v819_v23  ;;  %v875_v63 = vld [vmem:[#allocation11 + $0xb78] sm:$0xff]  ;;  %v2175_v1 = vpack.c.bf16 %v873_v60, %v865_v59  ;;  %v897_v23 = vld [vmem:[#allocation11 + $0xc28] sm:$0xff]  ;;  %v938_v60 = vld [vmem:[#allocation11 + $0xd70] sm:$0xff] }
 0x2c0   :  { %1623 = vmatprep.mubr.f32.mxu0 %v2729_v12  ;;  %2156 = vmatprep.subr.bf16.mxu1 %v2155_v2  ;;  %v826_v12 = vld [vmem:[#allocation11 + $0x9f0] sm:$0xff]  ;;  %v864_v2 = vld [vmem:[#allocation11 + $0xb20] sm:$0xff]  ;;  %v2303_v6 = vpack.c.bf16 %v875_v63, %v867_v61  ;;  %v905_v3 = vld [vmem:[#allocation11 + $0xc68] sm:$0xff] }
 0x2c1   :  { %2284 = vmatprep.subr.bf16.mxu0 %v2283_v7  ;;  %v2293_v36 = vpack.c.bf16 %v826_v12, %v818_v29  ;;  %v874_v7 = vld [vmem:[#allocation11 + $0xb70] sm:$0xff]  ;;  %v2183_v28 = vpack.c.bf16 %v905_v3, %v897_v23  ;;  %v896_v29 = vld [vmem:[#allocation11 + $0xc20] sm:$0xff]  ;;  %v945_v61 = vld [vmem:[#allocation11 + $0xda8] sm:$0xff] }
 0x2c2   :  { %2158 = vmatpush1.bf16.msra.mxu1 %v2157_v10  ;;  %v883_v10 = vld [vmem:[#allocation11 + $0xbb8] sm:$0xff]  ;;  %v2305_v14 = vpack.c.bf16 %v874_v7, %v866_v5  ;;  %v898_v12 = vld [vmem:[#allocation11 + $0xc30] sm:$0xff]  ;;  %v953_v63 = vld [vmem:[#allocation11 + $0xde8] sm:$0xff] }
 0x2c3   :  { %2286 = vmatpush1.bf16.msra.mxu0 %v2285_v11  ;;  %2160 = vmatprep.subr.bf16.mxu1 %v2159_v13  ;;  %v891_v11 = vld [vmem:[#allocation11 + $0xbf8] sm:$0xff]  ;;  %v2177_v13 = vpack.c.bf16 %v872_v4, %v864_v2  ;;  %v2313_v38 = vpack.c.bf16 %v906_v32, %v898_v12  ;;  %v2321_v2 = vpack.c.bf16 %v938_v60, %v930_v58  ;;  %v944_v5 = vld [vmem:[#allocation11 + $0xda0] sm:$0xff]  ;;  %v946_v7 = vld [vmem:[#allocation11 + $0xdb0] sm:$0xff] }
 0x2c4   :  { %2288 = vmatprep.subr.bf16.mxu0 %v2287_v17  ;;  %v888_v17 = vld [vmem:[#allocation11 + $0xbe0] sm:$0xff]  ;;  %v2307_v19 = vpack.c.bf16 %v891_v11, %v883_v10  ;;  %v2195_v4 = vpack.c.bf16 %v953_v63, %v945_v61  ;;  %v961_v10 = vld [vmem:[#allocation11 + $0xe28] sm:$0xff]  ;;  %v970_v3 = vld [vmem:[#allocation11 + $0xe70] sm:$0xff] }
 0x2c5   :  { %v969_v11 = vld [vmem:[#allocation11 + $0xe68] sm:$0xff]  ;;  %v976_v12 = vld [vmem:[#allocation11 + $0xea0] sm:$0xff]  ;;  %v978_v32 = vld [vmem:[#allocation11 + $0xeb0] sm:$0xff] }
 0x2c6   :  { %2162 = vmatpush1.bf16.msra.mxu1 %v2161_v42  ;;  %v899_v42 = vld [vmem:[#allocation11 + $0xc38] sm:$0xff]  ;;  %v1008_v58 = vld [vmem:[#allocation11 + $0xfa0] sm:$0xff]  ;;  %v1010_v61 = vld [vmem:[#allocation11 + $0xfb0] sm:$0xff] }
 0x2c7   :  { %2290 = vmatpush1.bf16.msra.mxu0 %v2289_v25  ;;  %2164 = vmatprep.subr.bf16.mxu1 %v2163_v26  ;;  %v907_v25 = vld [vmem:[#allocation11 + $0xc78] sm:$0xff]  ;;  %v2181_v26 = vpack.c.bf16 %v888_v17, %v880_v16  ;;  %v2325_v16 = vpack.c.bf16 %v954_v9, %v946_v7  ;;  %v2199_v17 = vpack.c.bf16 %v969_v11, %v961_v10  ;;  %v1018_v63 = vld [vmem:[#allocation11 + $0xff0] sm:$0xff] }
 0x2c8   :  { %2292 = vmatprep.subr.bf16.mxu0 %v2291_v30  ;;  %v904_v30 = vld [vmem:[#allocation11 + $0xc60] sm:$0xff]  ;;  %v2311_v31 = vpack.c.bf16 %v907_v25, %v899_v42  ;;  %v977_v42 = vld [vmem:[#allocation11 + $0xea8] sm:$0xff] }
 0x2c9   :  { %v985_v25 = vld [vmem:[#allocation11 + $0xee8] sm:$0xff] }
 0x2ca   :  { %2166 = vmatpush1.bf16.msra.mxu1 %v2165_v35  ;;  %v915_v35 = vld [vmem:[#allocation11 + $0xcb8] sm:$0xff] }
 0x2cb   :  { %2294 = vmatpush1.bf16.msra.mxu0 %v2293_v36  ;;  %2168 = vmatprep.subr.bf16.mxu1 %v2167_v37  ;;  %v923_v36 = vld [vmem:[#allocation11 + $0xcf8] sm:$0xff]  ;;  %v2185_v37 = vpack.c.bf16 %v904_v30, %v896_v29  ;;  %v2329_v29 = vpack.c.bf16 %v970_v3, %v962_v20  ;;  %v2203_v30 = vpack.c.bf16 %v985_v25, %v977_v42  ;;  %v1044_v3 = vsub.s32 5, %v2701_v21 }
 0x2cc   :  { %2296 = vmatprep.subr.bf16.mxu0 %v2295_v41  ;;  %v920_v41 = vld [vmem:[#allocation11 + $0xce0] sm:$0xff]  ;;  %v2315_v45 = vpack.c.bf16 %v923_v36, %v915_v35  ;;  %v993_v35 = vld [vmem:[#allocation11 + $0xf28] sm:$0xff]  ;;  %v1052_v42 = vsub.s32 7, %v2701_v21 }
 0x2cd   :  { %v1001_v36 = vld [vmem:[#allocation11 + $0xf68] sm:$0xff] }
 0x2ce   :  { %2170 = vmatpush1.bf16.msra.mxu1 %v2169_v50  ;;  %v931_v50 = vld [vmem:[#allocation11 + $0xd38] sm:$0xff] }
 0x2cf   :  { %2298 = vmatpush1.bf16.msra.mxu0 %v2297_v51  ;;  %2172 = vmatprep.subr.bf16.mxu1 %v2171_v52  ;;  %v939_v51 = vld [vmem:[#allocation11 + $0xd78] sm:$0xff]  ;;  %v2189_v52 = vpack.c.bf16 %v920_v41, %v912_v40  ;;  %v2333_v40 = vpack.c.bf16 %v986_v48, %v978_v32  ;;  %v2207_v41 = vpack.c.bf16 %v1001_v36, %v993_v35 }
 0x2d0   :  { %2300 = vmatprep.subr.bf16.mxu0 %v2299_v56  ;;  %v936_v56 = vld [vmem:[#allocation11 + $0xd60] sm:$0xff]  ;;  %v2319_v59 = vpack.c.bf16 %v939_v51, %v931_v50  ;;  %v1009_v50 = vld [vmem:[#allocation11 + $0xfa8] sm:$0xff] }
 0x2d1   :  { %v1017_v51 = vld [vmem:[#allocation11 + $0xfe8] sm:$0xff] }
 0x2d2   :  { %2174 = vmatpush1.bf16.msra.mxu1 %v2173_v0  ;;  %v947_v0 = vld [vmem:[#allocation11 + $0xdb8] sm:$0xff] }
 0x2d3   :  { %2302 = vmatpush1.bf16.msra.mxu0 %v2301_v62  ;;  %2176 = vmatprep.subr.bf16.mxu1 %v2175_v1  ;;  %v955_v62 = vld [vmem:[#allocation11 + $0xdf8] sm:$0xff]  ;;  %v2193_v1 = vpack.c.bf16 %v936_v56, %v928_v55  ;;  %v2337_v55 = vpack.c.bf16 %v1002_v49, %v994_v46  ;;  %v2211_v56 = vpack.c.bf16 %v1017_v51, %v1009_v50 }
 0x2d4   :  { %2304 = vmatprep.subr.bf16.mxu0 %v2303_v6  ;;  %v952_v6 = vld [vmem:[#allocation11 + $0xde0] sm:$0xff]  ;;  %v2323_v8 = vpack.c.bf16 %v955_v62, %v947_v0  ;;  %v2341_v62 = vpack.c.bf16 %v1018_v63, %v1010_v61 }
 0x2d6   :  { %2178 = vmatpush1.bf16.msra.mxu1 %v2177_v13  ;;  %v963_v13 = vld [vmem:[#allocation11 + $0xe38] sm:$0xff] }
 0x2d7   :  { %2306 = vmatpush1.bf16.msra.mxu0 %v2305_v14  ;;  %2180 = vmatprep.subr.bf16.mxu1 %v2179_v15  ;;  %v971_v14 = vld [vmem:[#allocation11 + $0xe78] sm:$0xff]  ;;  %v2197_v15 = vpack.c.bf16 %v952_v6, %v944_v5 }
 0x2d8   :  { %2308 = vmatprep.subr.bf16.mxu0 %v2307_v19  ;;  %v968_v19 = vld [vmem:[#allocation11 + $0xe60] sm:$0xff]  ;;  %v2327_v23 = vpack.c.bf16 %v971_v14, %v963_v13 }
 0x2da   :  { %2182 = vmatpush1.bf16.msra.mxu1 %v2181_v26  ;;  %v979_v26 = vld [vmem:[#allocation11 + $0xeb8] sm:$0xff] }
 0x2db   :  { %2310 = vmatpush1.bf16.msra.mxu0 %v2309_v27  ;;  %2184 = vmatprep.subr.bf16.mxu1 %v2183_v28  ;;  %v987_v27 = vld [vmem:[#allocation11 + $0xef8] sm:$0xff]  ;;  %v2201_v28 = vpack.c.bf16 %v968_v19, %v960_v18 }
 0x2dc   :  { %2312 = vmatprep.subr.bf16.mxu0 %v2311_v31  ;;  %v984_v31 = vld [vmem:[#allocation11 + $0xee0] sm:$0xff]  ;;  %v2331_v33 = vpack.c.bf16 %v987_v27, %v979_v26 }
 0x2de   :  { %2186 = vmatpush1.bf16.msra.mxu1 %v2185_v37  ;;  %v995_v37 = vld [vmem:[#allocation11 + $0xf38] sm:$0xff] }
 0x2df   :  { %2314 = vmatpush1.bf16.msra.mxu0 %v2313_v38  ;;  %2188 = vmatprep.subr.bf16.mxu1 %v2187_v39  ;;  %v1003_v38 = vld [vmem:[#allocation11 + $0xf78] sm:$0xff]  ;;  %v2205_v39 = vpack.c.bf16 %v984_v31, %v976_v12 }
 0x2e0   :  { %2316 = vmatprep.subr.bf16.mxu0 %v2315_v45  ;;  %v1000_v45 = vld [vmem:[#allocation11 + $0xf60] sm:$0xff]  ;;  %v2335_v47 = vpack.c.bf16 %v1003_v38, %v995_v37 }
 0x2e2   :  { %2190 = vmatpush1.bf16.msra.mxu1 %v2189_v52  ;;  %v1011_v52 = vld [vmem:[#allocation11 + $0xfb8] sm:$0xff] }
 0x2e3   :  { %2318 = vmatpush1.bf16.msra.mxu0 %v2317_v53  ;;  %2192 = vmatprep.subr.bf16.mxu1 %v2191_v54  ;;  %v1019_v53 = vld [vmem:[#allocation11 + $0xff8] sm:$0xff]  ;;  %v2209_v54 = vpack.c.bf16 %v1000_v45, %v992_v44 }
 0x2e4   :  { %2320 = vmatprep.subr.bf16.mxu0 %v2319_v59  ;;  %v1016_v59 = vld [vmem:[#allocation11 + $0xfe0] sm:$0xff]  ;;  %v2339_v60 = vpack.c.bf16 %v1019_v53, %v1011_v52 }
 0x2e5   :  { %v2213_v0 = vpack.c.bf16 %v1016_v59, %v1008_v58 }
 0x2e6   :  { %2194 = vmatpush1.bf16.msra.mxu1 %v2193_v1  ;;  %v1020_v1 = vld [vmem:[#allocation13] sm:$0xff] }
 0x2e7   :  { %2322 = vmatpush1.bf16.msra.mxu0 %v2321_v2  ;;  %2196 = vmatprep.subr.bf16.mxu1 %v2195_v4  ;;  %v2575_v2 = vmov 1983009808   ;;  %v1025_v5 = vrot.slane %v1020_v1, %v2704_v22  ;;  %v1033_v6 = vrot.slane %v1020_v1, %v352_v57  ;;  %v1029_v7 = vrot.slane %v1020_v1, %v2707_v24 }
 0x2e8   :  { %2324 = vmatprep.subr.bf16.mxu0 %v2323_v8  ;;  %v1641_v4 = vunpack.c.l.s4 %v2575_v2  ;;  %v1037_v9 = vrot.slane %v1020_v1, %v356_v43  ;;  %v1040_v24 = vsub.s32 4, %v2701_v21  ;;  %v1048_v43 = vsub.s32 6, %v2701_v21 }
 0x2e9   :  { %v1045_v27 = vrot.slane %v1020_v1, %v1044_v3 }
 0x2ea   :  { %2198 = vmatpush1.bf16.msra.mxu1 %v2197_v15  ;;  %v1642_v8 = vunpack.c.0.s8 %v1641_v4  ;;  %v1041_v25 = vrot.slane %v1020_v1, %v1040_v24  ;;  %v1049_v26 = vrot.slane %v1020_v1, %v1048_v43 }
 0x2eb   :  { %2326 = vmatpush1.bf16.msra.mxu0 %v2325_v16  ;;  %2200 = vmatprep.subr.bf16.mxu1 %v2199_v17 }
 0x2ec   :  { %2328 = vmatprep.subr.bf16.mxu0 %v2327_v23  ;;  %v1645_v17 = vsub.s32 %v1642_v8, %v2701_v21 }
 0x2ee   :  { %2202 = vmatpush1.bf16.msra.mxu1 %v2201_v28  ;;  %v1053_v28 = vrot.slane %v1020_v1, %v1052_v42 }
 0x2ef   :  { %2330 = vmatpush1.bf16.msra.mxu0 %v2329_v29  ;;  %2204 = vmatprep.subr.bf16.mxu1 %v2203_v30 }
 0x2f0   :  { %2332 = vmatprep.subr.bf16.mxu0 %v2331_v33 }
 0x2f2   :  { %2206 = vmatpush1.bf16.msra.mxu1 %v2205_v39 }
 0x2f3   :  { %2334 = vmatpush1.bf16.msra.mxu0 %v2333_v40  ;;  %2208 = vmatprep.subr.bf16.mxu1 %v2207_v41 }
 0x2f4   :  { %2336 = vmatprep.subr.bf16.mxu0 %v2335_v47 }
 0x2f6   :  { %2210 = vmatpush1.bf16.msra.mxu1 %v2209_v54 }
 0x2f7   :  { %2338 = vmatpush1.bf16.msra.mxu0 %v2337_v55  ;;  %2212 = vmatprep.subr.bf16.mxu1 %v2211_v56 }
 0x2f8   :  { %2340 = vmatprep.subr.bf16.mxu0 %v2339_v60 }
 0x2fa   :  { %2214 = vmatpush1.bf16.msra.mxu1 %v2213_v0 }
 0x2fb   :  { %2342 = vmatpush1.bf16.msra.mxu0 %v2341_v62 }
 0x2fd   :  { %1482 = vmatmul.mubr.f32.vlgmr.msra.gmra.mrb[4].mxu1 %v2740_v34 }
 0x2fe   :  { %1624 = vmatmul.mubr.f32.vlgmr.msra.gmra.mrb[6].mxu0 %v2740_v34 }
 0x350   :  { %v1199_v10 = vpop.f32.mrb[2].mxu1  ;;  %v1341_v11 = vpop.f32.mrb[4].mxu0 }
 0x351   :  { %v2343_v13 = vadd.f32 %v1199_v10, %v1025_v5  ;;  %v2345_v14 = vadd.f32 %v1341_v11, %v1033_v6  ;;  %v1201_v15 = vpop.f32.mrb[3].mxu1  ;;  %v1343_v34 = vpop.f32.mrb[5].mxu0 }
 0x352   :  { %v2344_v16 = vadd.f32 %v1201_v15, %v1029_v7  ;;  %v2346_v18 = vadd.f32 %v1343_v34, %v1037_v9 }
 0x354   :  { %v1638_v22 = vcombine.low %v2343_v13, %v2344_v16  ;;  %v1639_v19 = vcombine.low %v2345_v14, %v2346_v18 }
 0x356   :  { %v1646_v20 = vrot.slane %v1638_v22, %v1645_v17  ;;  %v1653_v57 = vrot.slane %v1639_v19, %v1645_v17 }
 0x358   :  { %v1654_v23 = vcombine.low %v1646_v20, %v1653_v57 }
 0x35a   :  { %1674 = vst [vmem:[#allocation14] sm:$0xff] %v1654_v23 }
 0x3d0   :  { %v1483_v29 = vpop.f32.mrb[4].mxu1 }
 0x3d1   :  { %v2347_v30 = vadd.f32 %v1483_v29, %v1041_v25  ;;  %v1625_v12 = vpop.f32.mrb[6].mxu0  ;;  %v1485_v31 = vpop.f32.mrb[5].mxu1 }
 0x3d2   :  { %v2349_v32 = vadd.f32 %v1625_v12, %v1049_v26  ;;  %v2348_v33 = vadd.f32 %v1485_v31, %v1045_v27  ;;  %v1627_v48 = vpop.f32.mrb[7].mxu0 }
 0x3d3   :  { %v2350_v35 = vadd.f32 %v1627_v48, %v1053_v28 }
 0x3d4   :  { %v1655_v36 = vcombine.low %v2347_v30, %v2348_v33 }
 0x3d5   :  { %v1656_v37 = vcombine.low %v2349_v32, %v2350_v35 }
 0x3d6   :  { %v1663_v38 = vrot.slane %v1655_v36, %v1645_v17 }
 0x3d7   :  { %v1670_v39 = vrot.slane %v1656_v37, %v1645_v17 }
 0x3d9   :  { %v1671_v40 = vcombine.low %v1663_v38, %v1670_v39 }
 0x3db   :  { %1675 = vst [vmem:[#allocation14 + $0x8] sm:$0xff] %v1671_v40 }
 0x3dc   :  { %2540 = shalt.err (!%p2537_p4)
}
 0x3dd   :  { %s2541_s3 = scalar_lea.hbm %s2782_s7, 256 }
 0x3de   :  { %p2542_p5 = scmp.ne.s32.totalorder %s2782_s7, %s2541_s3  ;;  %p2545_p6 = scmp.lt.u32.totalorder %s2541_s3, %s2782_s7 }
 0x3e0   :  { %p2547_p7 = pnand %p2545_p6, %p2542_p5 }
 0x3e2   :  { %2550 = shalt.err (!%p2547_p7)
}
 0x3e3   :  { %1685 = dma.vmem_to_hbm [thread:$0]  %s1683_s12, 256, %s2782_s7, [#allocation4]  }
 0x3e4   :  { %2559 = dma.done.wait [#allocation4], 256  }
 0x3e5   :  { %2560 = vsyncadd [#allocation4], 4294967040 }
 0x3e6   :  { %1689 = vsyncpa [#allocation3], 1 }
 0x3e7   :  { %1690 = vsyncpa [#allocation6], 1 }
 0x3e8   :  { %1691 = vsyncpa [#allocation9], 1 }
 0x3e9   :  { %1692 = vsyncpa [#allocation12], 1 }
 0x3ea   :  { %1693 = vsyncpa [#allocation4], 1 }

</bundles_post_ra>
